<compile_context>
chip_gen: v6e
topology: v6e:2x2x1
jax: 0.10.0
libtpu: 0.0.40
codegen_flags: <defaults>
</compile_context>

<pallas_src>
import math

import jax
import jax.numpy as jnp
from jax.experimental import pallas as pl
from jax.experimental.pallas import tpu as pltpu

# ---- model hyper-parameters (small, consistent with the module) ----
DIM = 32             # embedding dim
MLP_DIM = 64         # FFN hidden dim
DEPTH = 2            # number of transformer layers
NUM_HEADS = 2
DIM_PER_HEAD = 16
INNER = NUM_HEADS * DIM_PER_HEAD      # num_heads != 1 -> project_out=True
SCALE = DIM_PER_HEAD ** (-0.5)        # 0.25 — pre-folded into the Q columns of wqkv
LN_EPS = 1e-5                         # nn.LayerNorm default eps

BATCH = 2
SEQ = 8
GROUPS = NUM_HEADS * BATCH            # merged (head, batch) group axis for batched einsums
GELU_C = math.sqrt(2.0 / math.pi)


def _layernorm(x, gamma, beta):
    """Two-pass LayerNorm (subtract mean first): x (N, D), gamma/beta (1, D). f32 math."""
    d_inv = 1.0 / x.shape[-1]
    mu = jnp.sum(x, axis=-1, keepdims=True) * d_inv
    xc = x - mu
    var = jnp.sum(xc * xc, axis=-1, keepdims=True) * d_inv
    return xc * jax.lax.rsqrt(var + LN_EPS) * gamma + beta


def _softmax_lastdim(s):
    """Numerically-stable softmax along the last axis; divide via approx reciprocal (EUP)."""
    s = s - jnp.max(s, axis=-1, keepdims=True)
    e = jnp.exp(s)
    return e * pl.reciprocal(jnp.sum(e, axis=-1, keepdims=True), approx=True)


# --------------------------- fused kernel (whole forward) ---------------------------

def transformer_kernel(x_ref,
                       ag_ref, ab_ref, wqkv_ref, wout_ref, bout_ref,
                       fg_ref, fb_ref, w1_ref, b1_ref, w2_ref, b2_ref,
                       o_ref):
    f32 = jnp.float32
    bf16 = jnp.bfloat16

    def split_heads(qkv, base):
        """Columns [base : base+INNER] of qkv (N, 3*INNER) -> (H*B, L, dph).

        Only static lane slices, a leading-axis stack and leading-dim reshapes with the
        last dim preserved — no minor-dim transposes, no matmuls. Group index g = h*B + b.
        """
        parts = [qkv[:, base + h * DIM_PER_HEAD: base + (h + 1) * DIM_PER_HEAD]
                 for h in range(NUM_HEADS)]                     # H x (N, dph)
        t = jnp.stack(parts, axis=0)                            # (H, N, dph)
        return t.reshape(GROUPS, SEQ, DIM_PER_HEAD)             # (H*B, L, dph)

    def merge_heads(z):
        """(H*B, L, dph) -> (N, H*dph), head-major columns (matches torch transpose+reshape)."""
        cols = [z[h * BATCH:(h + 1) * BATCH].reshape(BATCH * SEQ, DIM_PER_HEAD)
                for h in range(NUM_HEADS)]                      # H x (N, dph)
        return jnp.concatenate(cols, axis=-1)                   # (N, INNER)

    x = x_ref[...]                                              # (N, D) f32, vreg-resident

    for layer in range(DEPTH):                                  # static unroll over layers
        # ---------------- x = x + SelfAttention(LayerNorm(x)) ----------------
        xn = _layernorm(x, ag_ref[layer], ab_ref[layer])        # (N, D)
        qkv = jnp.dot(xn.astype(bf16), wqkv_ref[layer],
                      preferred_element_type=f32)               # (N, 3*INNER), one MXU push

        q = split_heads(qkv, 0 * INNER)                         # SCALE pre-folded into W_q
        k = split_heads(qkv, 1 * INNER)
        v = split_heads(qkv, 2 * INNER)

        # Single all-head contractions, batched over the merged (H*B) group axis.
        s = jnp.einsum('gqd,gkd->gqk', q.astype(bf16), k.astype(bf16),
                       preferred_element_type=f32)              # (H*B, L, L)
        a = _softmax_lastdim(s)
        z = jnp.einsum('gqk,gkd->gqd', a.astype(bf16), v.astype(bf16),
                       preferred_element_type=f32)              # (H*B, L, dph)

        # Output projection: ONE dot contracting the full INNER = H*dph axis.
        z2 = merge_heads(z)                                     # (N, INNER)
        attn_out = jnp.dot(z2.astype(bf16), wout_ref[layer],
                           preferred_element_type=f32)          # (N, D)
        x = x + (attn_out + bout_ref[layer])                    # residual + out-proj bias

        # ---------------- x = x + FFN(LayerNorm(x)) ----------------
        xn = _layernorm(x, fg_ref[layer], fb_ref[layer])
        h1 = jnp.dot(xn.astype(bf16), w1_ref[layer],
                     preferred_element_type=f32) + b1_ref[layer]            # (N, MLP_DIM)
        # tanh-approx GELU: tanh lands on the EUP slot instead of an erf VALU polynomial.
        h1 = 0.5 * h1 * (1.0 + jnp.tanh(GELU_C * (h1 + 0.044715 * (h1 * h1 * h1))))
        ff = jnp.dot(h1.astype(bf16), w2_ref[layer],
                     preferred_element_type=f32) + b2_ref[layer]            # (N, D)
        x = x + ff
        # Dropout is p=0.0 -> identity (eval semantics).

    o_ref[...] = x


# --------------------------- wrapper ---------------------------

def _full_spec(shape):
    nd = len(shape)
    return pl.BlockSpec(shape, lambda i, nd=nd: (0,) * nd)


def transformer_forward(x, p):
    B, L, D = x.shape
    N = B * L
    x2 = x.reshape(N, D)                               # flatten batch into matmul M dim (free, in XLA)

    inputs = (x2, p["ag"], p["ab"], p["wqkv"], p["wout"], p["bout"],
              p["fg"], p["fb"], p["w1"], p["b1"], p["w2"], p["b2"])
    in_specs = [_full_spec(a.shape) for a in inputs]

    # Advisory cost estimate for XLA scheduling around the custom call.
    flops_per_layer = (
        2 * N * D * 3 * INNER                                  # qkv projection
        + 2 * (2 * B * NUM_HEADS * L * L * DIM_PER_HEAD)       # scores + attn@v
        + 2 * N * INNER * D                                    # output projection
        + 2 * N * D * MLP_DIM + 2 * N * MLP_DIM * D            # ffn
    )
    flops = DEPTH * flops_per_layer
    transcendentals = DEPTH * (B * NUM_HEADS * L * L           # exp
                               + B * NUM_HEADS * L             # approx reciprocal
                               + N * MLP_DIM                   # tanh (gelu)
                               + 2 * N)                        # rsqrt (2 layernorms)
    bytes_accessed = (sum(int(a.size) * a.dtype.itemsize for a in inputs)
                      + N * D * 4)                             # + output

    out = pl.pallas_call(
        transformer_kernel,
        out_shape=jax.ShapeDtypeStruct((N, D), x.dtype),
        grid=(1,),
        in_specs=in_specs,
        out_specs=_full_spec((N, D)),
        compiler_params=pltpu.CompilerParams(dimension_semantics=("arbitrary",)),
        cost_estimate=pl.CostEstimate(flops=int(flops),
                                      transcendentals=int(transcendentals),
                                      bytes_accessed=int(bytes_accessed)),
    )(*inputs)
    return out.reshape(B, L, D)


# --------------------------- deterministic parameter init ---------------------------

def init_params(key):
    ks = jax.random.split(key, 8)

    def nrm(k, shape):
        return 0.02 * jax.random.normal(k, shape, jnp.float32)

    # All layers stacked along a leading DEPTH axis (indexed statically in-kernel).
    # Matmul weights stored in bf16 (MXU inputs); LN params / biases stay f32.
    # wqkv columns are laid out (qkv, head, dph) like torch's to_qkv; the attention scale
    # (0.25, exact in bf16) is pre-folded into the Q columns so the kernel has no score mul.
    wqkv = nrm(ks[0], (DEPTH, DIM, 3 * INNER))
    wqkv = wqkv.at[:, :, :INNER].multiply(SCALE)
    return dict(
        ag=jnp.ones((DEPTH, 1, DIM), jnp.float32),
        ab=jnp.zeros((DEPTH, 1, DIM), jnp.float32),
        wqkv=wqkv.astype(jnp.bfloat16),
        wout=nrm(ks[1], (DEPTH, INNER, DIM)).astype(jnp.bfloat16),
        bout=nrm(ks[2], (DEPTH, 1, DIM)),
        fg=jnp.ones((DEPTH, 1, DIM), jnp.float32),
        fb=jnp.zeros((DEPTH, 1, DIM), jnp.float32),
        w1=nrm(ks[3], (DEPTH, DIM, MLP_DIM)).astype(jnp.bfloat16),
        b1=nrm(ks[4], (DEPTH, 1, MLP_DIM)),
        w2=nrm(ks[5], (DEPTH, MLP_DIM, DIM)).astype(jnp.bfloat16),
        b2=nrm(ks[6], (DEPTH, 1, DIM)),
    )


if __name__ == "__main__":
    key = jax.random.PRNGKey(0)
    x = jax.random.normal(jax.random.fold_in(key, 123), (BATCH, SEQ, DIM), jnp.float32)
    params = init_params(key)

    fwd = jax.jit(transformer_forward)
    y = fwd(x, params)
    jax.block_until_ready(y)
    assert y.shape == x.shape and y.dtype == x.dtype
    assert bool(jnp.all(jnp.isfinite(y)))
    print("KERNEL_OK")
</pallas_src>

<mosaic_0001>
module attributes {stable_mosaic.version = 11 : i64} {
  func.func @transformer_kernel(%arg0: i32, %arg1: memref<16x32xf32, #tpu.memory_space<vmem>>, %arg2: memref<2x1x32xf32, #tpu.memory_space<vmem>>, %arg3: memref<2x1x32xf32, #tpu.memory_space<vmem>>, %arg4: memref<2x32x96xbf16, #tpu.memory_space<vmem>>, %arg5: memref<2x32x32xbf16, #tpu.memory_space<vmem>>, %arg6: memref<2x1x32xf32, #tpu.memory_space<vmem>>, %arg7: memref<2x1x32xf32, #tpu.memory_space<vmem>>, %arg8: memref<2x1x32xf32, #tpu.memory_space<vmem>>, %arg9: memref<2x32x64xbf16, #tpu.memory_space<vmem>>, %arg10: memref<2x1x64xf32, #tpu.memory_space<vmem>>, %arg11: memref<2x64x32xbf16, #tpu.memory_space<vmem>>, %arg12: memref<2x1x32xf32, #tpu.memory_space<vmem>>, %arg13: memref<16x32xf32, #tpu.memory_space<vmem>>) attributes {dimension_semantics = [#tpu.dimension_semantics<arbitrary>], iteration_bounds = array<i64: 1>, scalar_prefetch = 0 : i64, scratch_operands = 0 : i64, tpu.core_type = #tpu.core_type<tc>, window_params = [{pipeline_mode = #tpu.pipeline_mode<synchronous>, transform_indices = @transform_0, window_bounds = array<i64: 16, 32>}, {pipeline_mode = #tpu.pipeline_mode<synchronous>, transform_indices = @transform_1, window_bounds = array<i64: 2, 1, 32>}, {pipeline_mode = #tpu.pipeline_mode<synchronous>, transform_indices = @transform_2, window_bounds = array<i64: 2, 1, 32>}, {pipeline_mode = #tpu.pipeline_mode<synchronous>, transform_indices = @transform_3, window_bounds = array<i64: 2, 32, 96>}, {pipeline_mode = #tpu.pipeline_mode<synchronous>, transform_indices = @transform_4, window_bounds = array<i64: 2, 32, 32>}, {pipeline_mode = #tpu.pipeline_mode<synchronous>, transform_indices = @transform_5, window_bounds = array<i64: 2, 1, 32>}, {pipeline_mode = #tpu.pipeline_mode<synchronous>, transform_indices = @transform_6, window_bounds = array<i64: 2, 1, 32>}, {pipeline_mode = #tpu.pipeline_mode<synchronous>, transform_indices = @transform_7, window_bounds = array<i64: 2, 1, 32>}, {pipeline_mode = #tpu.pipeline_mode<synchronous>, transform_indices = @transform_8, window_bounds = array<i64: 2, 32, 64>}, {pipeline_mode = #tpu.pipeline_mode<synchronous>, transform_indices = @transform_9, window_bounds = array<i64: 2, 1, 64>}, {pipeline_mode = #tpu.pipeline_mode<synchronous>, transform_indices = @transform_10, window_bounds = array<i64: 2, 64, 32>}, {pipeline_mode = #tpu.pipeline_mode<synchronous>, transform_indices = @transform_11, window_bounds = array<i64: 2, 1, 32>}, {pipeline_mode = #tpu.pipeline_mode<synchronous>, transform_indices = @transform_12, window_bounds = array<i64: 16, 32>}]} {
    %c0 = arith.constant 0 : index
    %c0_0 = arith.constant 0 : index
    %0 = vector.load %arg1[%c0, %c0_0] : memref<16x32xf32, #tpu.memory_space<vmem>>, vector<16x32xf32>
    %c0_1 = arith.constant 0 : index
    %c0_2 = arith.constant 0 : index
    %c0_3 = arith.constant 0 : index
    %1 = vector.load %arg2[%c0_1, %c0_2, %c0_3] : memref<2x1x32xf32, #tpu.memory_space<vmem>>, vector<1x1x32xf32>
    %2 = vector.shape_cast %1 : vector<1x1x32xf32> to vector<1x32xf32>
    %c0_4 = arith.constant 0 : index
    %c0_5 = arith.constant 0 : index
    %c0_6 = arith.constant 0 : index
    %3 = vector.load %arg3[%c0_4, %c0_5, %c0_6] : memref<2x1x32xf32, #tpu.memory_space<vmem>>, vector<1x1x32xf32>
    %4 = vector.shape_cast %3 : vector<1x1x32xf32> to vector<1x32xf32>
    %cst = arith.constant dense<0.000000e+00> : vector<16xf32>
    %5 = vector.multi_reduction <add>, %0, %cst [1] : vector<16x32xf32> to vector<16xf32>
    %6 = vector.shape_cast %5 : vector<16xf32> to vector<16x1xf32>
    %cst_7 = arith.constant 3.125000e-02 : f32
    %7 = vector.broadcast %cst_7 : f32 to vector<16x1xf32>
    %8 = arith.mulf %6, %7 : vector<16x1xf32>
    %9 = vector.broadcast %8 : vector<16x1xf32> to vector<16x32xf32>
    %10 = arith.subf %0, %9 : vector<16x32xf32>
    %11 = arith.mulf %10, %10 : vector<16x32xf32>
    %cst_8 = arith.constant dense<0.000000e+00> : vector<16xf32>
    %12 = vector.multi_reduction <add>, %11, %cst_8 [1] : vector<16x32xf32> to vector<16xf32>
    %13 = vector.shape_cast %12 : vector<16xf32> to vector<16x1xf32>
    %cst_9 = arith.constant 3.125000e-02 : f32
    %14 = vector.broadcast %cst_9 : f32 to vector<16x1xf32>
    %15 = arith.mulf %13, %14 : vector<16x1xf32>
    %cst_10 = arith.constant 9.99999974E-6 : f32
    %16 = vector.broadcast %cst_10 : f32 to vector<16x1xf32>
    %17 = arith.addf %15, %16 : vector<16x1xf32>
    %18 = math.rsqrt %17 : vector<16x1xf32>
    %19 = vector.broadcast %18 : vector<16x1xf32> to vector<16x32xf32>
    %20 = arith.mulf %10, %19 : vector<16x32xf32>
    %21 = vector.broadcast %2 : vector<1x32xf32> to vector<16x32xf32>
    %22 = arith.mulf %20, %21 : vector<16x32xf32>
    %23 = vector.broadcast %4 : vector<1x32xf32> to vector<16x32xf32>
    %24 = arith.addf %22, %23 : vector<16x32xf32>
    %25 = arith.truncf %24 : vector<16x32xf32> to vector<16x32xbf16>
    %c0_11 = arith.constant 0 : index
    %c0_12 = arith.constant 0 : index
    %c0_13 = arith.constant 0 : index
    %26 = vector.load %arg4[%c0_11, %c0_12, %c0_13] : memref<2x32x96xbf16, #tpu.memory_space<vmem>>, vector<1x32x96xbf16>
    %27 = vector.shape_cast %26 : vector<1x32x96xbf16> to vector<32x96xbf16>
    %cst_14 = arith.constant dense<0.000000e+00> : vector<16x96xf32>
    %28 = tpu.matmul %25, %27, %cst_14 {dimension_numbers = #tpu.dot_dimension_numbers<[1], [0], [0], [1], [0, 0, 1, 1], [], []>} : vector<16x32xbf16>, vector<32x96xbf16>, vector<16x96xf32> -> vector<16x96xf32>
    %29 = vector.extract_strided_slice %28 {offsets = [0, 0], sizes = [16, 16], strides = [1, 1]} : vector<16x96xf32> to vector<16x16xf32>
    %30 = vector.extract_strided_slice %28 {offsets = [0, 16], sizes = [16, 16], strides = [1, 1]} : vector<16x96xf32> to vector<16x16xf32>
    %31 = vector.shape_cast %29 : vector<16x16xf32> to vector<1x16x16xf32>
    %32 = vector.shape_cast %30 : vector<16x16xf32> to vector<1x16x16xf32>
    %33 = tpu.concatenate %31, %32 in 0 : vector<1x16x16xf32>, vector<1x16x16xf32> -> vector<2x16x16xf32>
    %34 = vector.shape_cast %33 : vector<2x16x16xf32> to vector<4x8x16xf32>
    %35 = vector.extract_strided_slice %28 {offsets = [0, 32], sizes = [16, 16], strides = [1, 1]} : vector<16x96xf32> to vector<16x16xf32>
    %36 = vector.extract_strided_slice %28 {offsets = [0, 48], sizes = [16, 16], strides = [1, 1]} : vector<16x96xf32> to vector<16x16xf32>
    %37 = vector.shape_cast %35 : vector<16x16xf32> to vector<1x16x16xf32>
    %38 = vector.shape_cast %36 : vector<16x16xf32> to vector<1x16x16xf32>
    %39 = tpu.concatenate %37, %38 in 0 : vector<1x16x16xf32>, vector<1x16x16xf32> -> vector<2x16x16xf32>
    %40 = vector.shape_cast %39 : vector<2x16x16xf32> to vector<4x8x16xf32>
    %41 = vector.extract_strided_slice %28 {offsets = [0, 64], sizes = [16, 16], strides = [1, 1]} : vector<16x96xf32> to vector<16x16xf32>
    %42 = vector.extract_strided_slice %28 {offsets = [0, 80], sizes = [16, 16], strides = [1, 1]} : vector<16x96xf32> to vector<16x16xf32>
    %43 = vector.shape_cast %41 : vector<16x16xf32> to vector<1x16x16xf32>
    %44 = vector.shape_cast %42 : vector<16x16xf32> to vector<1x16x16xf32>
    %45 = tpu.concatenate %43, %44 in 0 : vector<1x16x16xf32>, vector<1x16x16xf32> -> vector<2x16x16xf32>
    %46 = vector.shape_cast %45 : vector<2x16x16xf32> to vector<4x8x16xf32>
    %47 = arith.truncf %34 : vector<4x8x16xf32> to vector<4x8x16xbf16>
    %48 = arith.truncf %40 : vector<4x8x16xf32> to vector<4x8x16xbf16>
    "tpu.trace_start"() <{level = 10 : i32, message = "gqd,gkd->gqk"}> : () -> ()
    %cst_15 = arith.constant dense<0.000000e+00> : vector<4x8x8xf32>
    %49 = tpu.matmul %47, %48, %cst_15 {dimension_numbers = #tpu.dot_dimension_numbers<[2], [2], [1], [1], [0, 0, 0, 1, 1, 1], [0], [0]>} : vector<4x8x16xbf16>, vector<4x8x16xbf16>, vector<4x8x8xf32> -> vector<4x8x8xf32>
    "tpu.trace_stop"() : () -> ()
    %cst_16 = arith.constant dense<0xFF800000> : vector<4x8xf32>
    %50 = vector.multi_reduction <maximumf>, %49, %cst_16 [2] : vector<4x8x8xf32> to vector<4x8xf32>
    %51 = vector.shape_cast %50 : vector<4x8xf32> to vector<4x8x1xf32>
    %52 = vector.broadcast %51 : vector<4x8x1xf32> to vector<4x8x8xf32>
    %53 = arith.subf %49, %52 : vector<4x8x8xf32>
    %54 = math.exp %53 : vector<4x8x8xf32>
    %cst_17 = arith.constant dense<0.000000e+00> : vector<4x8xf32>
    %55 = vector.multi_reduction <add>, %54, %cst_17 [2] : vector<4x8x8xf32> to vector<4x8xf32>
    %56 = vector.shape_cast %55 : vector<4x8xf32> to vector<4x8x1xf32>
    %57 = tpu.reciprocal %56 {approx = true} : vector<4x8x1xf32> -> vector<4x8x1xf32>
    %58 = vector.broadcast %57 : vector<4x8x1xf32> to vector<4x8x8xf32>
    %59 = arith.mulf %54, %58 : vector<4x8x8xf32>
    %60 = arith.truncf %59 : vector<4x8x8xf32> to vector<4x8x8xbf16>
    %61 = arith.truncf %46 : vector<4x8x16xf32> to vector<4x8x16xbf16>
    "tpu.trace_start"() <{level = 10 : i32, message = "gqk,gkd->gqd"}> : () -> ()
    %cst_18 = arith.constant dense<0.000000e+00> : vector<4x8x16xf32>
    %62 = tpu.matmul %60, %61, %cst_18 {dimension_numbers = #tpu.dot_dimension_numbers<[2], [1], [1], [2], [0, 0, 0, 1, 1, 2], [0], [0]>} : vector<4x8x8xbf16>, vector<4x8x16xbf16>, vector<4x8x16xf32> -> vector<4x8x16xf32>
    "tpu.trace_stop"() : () -> ()
    %63 = vector.extract_strided_slice %62 {offsets = [0, 0, 0], sizes = [2, 8, 16], strides = [1, 1, 1]} : vector<4x8x16xf32> to vector<2x8x16xf32>
    %64 = vector.shape_cast %63 : vector<2x8x16xf32> to vector<16x16xf32>
    %65 = vector.extract_strided_slice %62 {offsets = [2, 0, 0], sizes = [2, 8, 16], strides = [1, 1, 1]} : vector<4x8x16xf32> to vector<2x8x16xf32>
    %66 = vector.shape_cast %65 : vector<2x8x16xf32> to vector<16x16xf32>
    %67 = tpu.concatenate %64, %66 in 1 : vector<16x16xf32>, vector<16x16xf32> -> vector<16x32xf32>
    %68 = arith.truncf %67 : vector<16x32xf32> to vector<16x32xbf16>
    %c0_19 = arith.constant 0 : index
    %c0_20 = arith.constant 0 : index
    %c0_21 = arith.constant 0 : index
    %69 = vector.load %arg5[%c0_19, %c0_20, %c0_21] : memref<2x32x32xbf16, #tpu.memory_space<vmem>>, vector<1x32x32xbf16>
    %70 = vector.shape_cast %69 : vector<1x32x32xbf16> to vector<32x32xbf16>
    %cst_22 = arith.constant dense<0.000000e+00> : vector<16x32xf32>
    %71 = tpu.matmul %68, %70, %cst_22 {dimension_numbers = #tpu.dot_dimension_numbers<[1], [0], [0], [1], [0, 0, 1, 1], [], []>} : vector<16x32xbf16>, vector<32x32xbf16>, vector<16x32xf32> -> vector<16x32xf32>
    %c0_23 = arith.constant 0 : index
    %c0_24 = arith.constant 0 : index
    %c0_25 = arith.constant 0 : index
    %72 = vector.load %arg6[%c0_23, %c0_24, %c0_25] : memref<2x1x32xf32, #tpu.memory_space<vmem>>, vector<1x1x32xf32>
    %73 = vector.shape_cast %72 : vector<1x1x32xf32> to vector<1x32xf32>
    %74 = vector.broadcast %73 : vector<1x32xf32> to vector<16x32xf32>
    %75 = arith.addf %71, %74 : vector<16x32xf32>
    %76 = arith.addf %0, %75 : vector<16x32xf32>
    %c0_26 = arith.constant 0 : index
    %c0_27 = arith.constant 0 : index
    %c0_28 = arith.constant 0 : index
    %77 = vector.load %arg7[%c0_26, %c0_27, %c0_28] : memref<2x1x32xf32, #tpu.memory_space<vmem>>, vector<1x1x32xf32>
    %78 = vector.shape_cast %77 : vector<1x1x32xf32> to vector<1x32xf32>
    %c0_29 = arith.constant 0 : index
    %c0_30 = arith.constant 0 : index
    %c0_31 = arith.constant 0 : index
    %79 = vector.load %arg8[%c0_29, %c0_30, %c0_31] : memref<2x1x32xf32, #tpu.memory_space<vmem>>, vector<1x1x32xf32>
    %80 = vector.shape_cast %79 : vector<1x1x32xf32> to vector<1x32xf32>
    %cst_32 = arith.constant dense<0.000000e+00> : vector<16xf32>
    %81 = vector.multi_reduction <add>, %76, %cst_32 [1] : vector<16x32xf32> to vector<16xf32>
    %82 = vector.shape_cast %81 : vector<16xf32> to vector<16x1xf32>
    %cst_33 = arith.constant 3.125000e-02 : f32
    %83 = vector.broadcast %cst_33 : f32 to vector<16x1xf32>
    %84 = arith.mulf %82, %83 : vector<16x1xf32>
    %85 = vector.broadcast %84 : vector<16x1xf32> to vector<16x32xf32>
    %86 = arith.subf %76, %85 : vector<16x32xf32>
    %87 = arith.mulf %86, %86 : vector<16x32xf32>
    %cst_34 = arith.constant dense<0.000000e+00> : vector<16xf32>
    %88 = vector.multi_reduction <add>, %87, %cst_34 [1] : vector<16x32xf32> to vector<16xf32>
    %89 = vector.shape_cast %88 : vector<16xf32> to vector<16x1xf32>
    %cst_35 = arith.constant 3.125000e-02 : f32
    %90 = vector.broadcast %cst_35 : f32 to vector<16x1xf32>
    %91 = arith.mulf %89, %90 : vector<16x1xf32>
    %cst_36 = arith.constant 9.99999974E-6 : f32
    %92 = vector.broadcast %cst_36 : f32 to vector<16x1xf32>
    %93 = arith.addf %91, %92 : vector<16x1xf32>
    %94 = math.rsqrt %93 : vector<16x1xf32>
    %95 = vector.broadcast %94 : vector<16x1xf32> to vector<16x32xf32>
    %96 = arith.mulf %86, %95 : vector<16x32xf32>
    %97 = vector.broadcast %78 : vector<1x32xf32> to vector<16x32xf32>
    %98 = arith.mulf %96, %97 : vector<16x32xf32>
    %99 = vector.broadcast %80 : vector<1x32xf32> to vector<16x32xf32>
    %100 = arith.addf %98, %99 : vector<16x32xf32>
    %101 = arith.truncf %100 : vector<16x32xf32> to vector<16x32xbf16>
    %c0_37 = arith.constant 0 : index
    %c0_38 = arith.constant 0 : index
    %c0_39 = arith.constant 0 : index
    %102 = vector.load %arg9[%c0_37, %c0_38, %c0_39] : memref<2x32x64xbf16, #tpu.memory_space<vmem>>, vector<1x32x64xbf16>
    %103 = vector.shape_cast %102 : vector<1x32x64xbf16> to vector<32x64xbf16>
    %cst_40 = arith.constant dense<0.000000e+00> : vector<16x64xf32>
    %104 = tpu.matmul %101, %103, %cst_40 {dimension_numbers = #tpu.dot_dimension_numbers<[1], [0], [0], [1], [0, 0, 1, 1], [], []>} : vector<16x32xbf16>, vector<32x64xbf16>, vector<16x64xf32> -> vector<16x64xf32>
    %c0_41 = arith.constant 0 : index
    %c0_42 = arith.constant 0 : index
    %c0_43 = arith.constant 0 : index
    %105 = vector.load %arg10[%c0_41, %c0_42, %c0_43] : memref<2x1x64xf32, #tpu.memory_space<vmem>>, vector<1x1x64xf32>
    %106 = vector.shape_cast %105 : vector<1x1x64xf32> to vector<1x64xf32>
    %107 = vector.broadcast %106 : vector<1x64xf32> to vector<16x64xf32>
    %108 = arith.addf %104, %107 : vector<16x64xf32>
    %cst_44 = arith.constant 5.000000e-01 : f32
    %109 = vector.broadcast %cst_44 : f32 to vector<16x64xf32>
    %110 = arith.mulf %109, %108 : vector<16x64xf32>
    %111 = arith.mulf %108, %108 : vector<16x64xf32>
    %112 = arith.mulf %111, %108 : vector<16x64xf32>
    %cst_45 = arith.constant 4.471500e-02 : f32
    %113 = vector.broadcast %cst_45 : f32 to vector<16x64xf32>
    %114 = arith.mulf %113, %112 : vector<16x64xf32>
    %115 = arith.addf %108, %114 : vector<16x64xf32>
    %cst_46 = arith.constant 0.797884583 : f32
    %116 = vector.broadcast %cst_46 : f32 to vector<16x64xf32>
    %117 = arith.mulf %116, %115 : vector<16x64xf32>
    %118 = math.tanh %117 : vector<16x64xf32>
    %cst_47 = arith.constant 1.000000e+00 : f32
    %119 = vector.broadcast %cst_47 : f32 to vector<16x64xf32>
    %120 = arith.addf %119, %118 : vector<16x64xf32>
    %121 = arith.mulf %110, %120 : vector<16x64xf32>
    %122 = arith.truncf %121 : vector<16x64xf32> to vector<16x64xbf16>
    %c0_48 = arith.constant 0 : index
    %c0_49 = arith.constant 0 : index
    %c0_50 = arith.constant 0 : index
    %123 = vector.load %arg11[%c0_48, %c0_49, %c0_50] : memref<2x64x32xbf16, #tpu.memory_space<vmem>>, vector<1x64x32xbf16>
    %124 = vector.shape_cast %123 : vector<1x64x32xbf16> to vector<64x32xbf16>
    %cst_51 = arith.constant dense<0.000000e+00> : vector<16x32xf32>
    %125 = tpu.matmul %122, %124, %cst_51 {dimension_numbers = #tpu.dot_dimension_numbers<[1], [0], [0], [1], [0, 0, 1, 1], [], []>} : vector<16x64xbf16>, vector<64x32xbf16>, vector<16x32xf32> -> vector<16x32xf32>
    %c0_52 = arith.constant 0 : index
    %c0_53 = arith.constant 0 : index
    %c0_54 = arith.constant 0 : index
    %126 = vector.load %arg12[%c0_52, %c0_53, %c0_54] : memref<2x1x32xf32, #tpu.memory_space<vmem>>, vector<1x1x32xf32>
    %127 = vector.shape_cast %126 : vector<1x1x32xf32> to vector<1x32xf32>
    %128 = vector.broadcast %127 : vector<1x32xf32> to vector<16x32xf32>
    %129 = arith.addf %125, %128 : vector<16x32xf32>
    %130 = arith.addf %76, %129 : vector<16x32xf32>
    %c1 = arith.constant 1 : index
    %c0_55 = arith.constant 0 : index
    %c0_56 = arith.constant 0 : index
    %131 = vector.load %arg2[%c1, %c0_55, %c0_56] : memref<2x1x32xf32, #tpu.memory_space<vmem>>, vector<1x1x32xf32>
    %132 = vector.shape_cast %131 : vector<1x1x32xf32> to vector<1x32xf32>
    %c1_57 = arith.constant 1 : index
    %c0_58 = arith.constant 0 : index
    %c0_59 = arith.constant 0 : index
    %133 = vector.load %arg3[%c1_57, %c0_58, %c0_59] : memref<2x1x32xf32, #tpu.memory_space<vmem>>, vector<1x1x32xf32>
    %134 = vector.shape_cast %133 : vector<1x1x32xf32> to vector<1x32xf32>
    %cst_60 = arith.constant dense<0.000000e+00> : vector<16xf32>
    %135 = vector.multi_reduction <add>, %130, %cst_60 [1] : vector<16x32xf32> to vector<16xf32>
    %136 = vector.shape_cast %135 : vector<16xf32> to vector<16x1xf32>
    %cst_61 = arith.constant 3.125000e-02 : f32
    %137 = vector.broadcast %cst_61 : f32 to vector<16x1xf32>
    %138 = arith.mulf %136, %137 : vector<16x1xf32>
    %139 = vector.broadcast %138 : vector<16x1xf32> to vector<16x32xf32>
    %140 = arith.subf %130, %139 : vector<16x32xf32>
    %141 = arith.mulf %140, %140 : vector<16x32xf32>
    %cst_62 = arith.constant dense<0.000000e+00> : vector<16xf32>
    %142 = vector.multi_reduction <add>, %141, %cst_62 [1] : vector<16x32xf32> to vector<16xf32>
    %143 = vector.shape_cast %142 : vector<16xf32> to vector<16x1xf32>
    %cst_63 = arith.constant 3.125000e-02 : f32
    %144 = vector.broadcast %cst_63 : f32 to vector<16x1xf32>
    %145 = arith.mulf %143, %144 : vector<16x1xf32>
    %cst_64 = arith.constant 9.99999974E-6 : f32
    %146 = vector.broadcast %cst_64 : f32 to vector<16x1xf32>
    %147 = arith.addf %145, %146 : vector<16x1xf32>
    %148 = math.rsqrt %147 : vector<16x1xf32>
    %149 = vector.broadcast %148 : vector<16x1xf32> to vector<16x32xf32>
    %150 = arith.mulf %140, %149 : vector<16x32xf32>
    %151 = vector.broadcast %132 : vector<1x32xf32> to vector<16x32xf32>
    %152 = arith.mulf %150, %151 : vector<16x32xf32>
    %153 = vector.broadcast %134 : vector<1x32xf32> to vector<16x32xf32>
    %154 = arith.addf %152, %153 : vector<16x32xf32>
    %155 = arith.truncf %154 : vector<16x32xf32> to vector<16x32xbf16>
    %c1_65 = arith.constant 1 : index
    %c0_66 = arith.constant 0 : index
    %c0_67 = arith.constant 0 : index
    %156 = vector.load %arg4[%c1_65, %c0_66, %c0_67] : memref<2x32x96xbf16, #tpu.memory_space<vmem>>, vector<1x32x96xbf16>
    %157 = vector.shape_cast %156 : vector<1x32x96xbf16> to vector<32x96xbf16>
    %cst_68 = arith.constant dense<0.000000e+00> : vector<16x96xf32>
    %158 = tpu.matmul %155, %157, %cst_68 {dimension_numbers = #tpu.dot_dimension_numbers<[1], [0], [0], [1], [0, 0, 1, 1], [], []>} : vector<16x32xbf16>, vector<32x96xbf16>, vector<16x96xf32> -> vector<16x96xf32>
    %159 = vector.extract_strided_slice %158 {offsets = [0, 0], sizes = [16, 16], strides = [1, 1]} : vector<16x96xf32> to vector<16x16xf32>
    %160 = vector.extract_strided_slice %158 {offsets = [0, 16], sizes = [16, 16], strides = [1, 1]} : vector<16x96xf32> to vector<16x16xf32>
    %161 = vector.shape_cast %159 : vector<16x16xf32> to vector<1x16x16xf32>
    %162 = vector.shape_cast %160 : vector<16x16xf32> to vector<1x16x16xf32>
    %163 = tpu.concatenate %161, %162 in 0 : vector<1x16x16xf32>, vector<1x16x16xf32> -> vector<2x16x16xf32>
    %164 = vector.shape_cast %163 : vector<2x16x16xf32> to vector<4x8x16xf32>
    %165 = vector.extract_strided_slice %158 {offsets = [0, 32], sizes = [16, 16], strides = [1, 1]} : vector<16x96xf32> to vector<16x16xf32>
    %166 = vector.extract_strided_slice %158 {offsets = [0, 48], sizes = [16, 16], strides = [1, 1]} : vector<16x96xf32> to vector<16x16xf32>
    %167 = vector.shape_cast %165 : vector<16x16xf32> to vector<1x16x16xf32>
    %168 = vector.shape_cast %166 : vector<16x16xf32> to vector<1x16x16xf32>
    %169 = tpu.concatenate %167, %168 in 0 : vector<1x16x16xf32>, vector<1x16x16xf32> -> vector<2x16x16xf32>
    %170 = vector.shape_cast %169 : vector<2x16x16xf32> to vector<4x8x16xf32>
    %171 = vector.extract_strided_slice %158 {offsets = [0, 64], sizes = [16, 16], strides = [1, 1]} : vector<16x96xf32> to vector<16x16xf32>
    %172 = vector.extract_strided_slice %158 {offsets = [0, 80], sizes = [16, 16], strides = [1, 1]} : vector<16x96xf32> to vector<16x16xf32>
    %173 = vector.shape_cast %171 : vector<16x16xf32> to vector<1x16x16xf32>
    %174 = vector.shape_cast %172 : vector<16x16xf32> to vector<1x16x16xf32>
    %175 = tpu.concatenate %173, %174 in 0 : vector<1x16x16xf32>, vector<1x16x16xf32> -> vector<2x16x16xf32>
    %176 = vector.shape_cast %175 : vector<2x16x16xf32> to vector<4x8x16xf32>
    %177 = arith.truncf %164 : vector<4x8x16xf32> to vector<4x8x16xbf16>
    %178 = arith.truncf %170 : vector<4x8x16xf32> to vector<4x8x16xbf16>
    "tpu.trace_start"() <{level = 10 : i32, message = "gqd,gkd->gqk"}> : () -> ()
    %cst_69 = arith.constant dense<0.000000e+00> : vector<4x8x8xf32>
    %179 = tpu.matmul %177, %178, %cst_69 {dimension_numbers = #tpu.dot_dimension_numbers<[2], [2], [1], [1], [0, 0, 0, 1, 1, 1], [0], [0]>} : vector<4x8x16xbf16>, vector<4x8x16xbf16>, vector<4x8x8xf32> -> vector<4x8x8xf32>
    "tpu.trace_stop"() : () -> ()
    %cst_70 = arith.constant dense<0xFF800000> : vector<4x8xf32>
    %180 = vector.multi_reduction <maximumf>, %179, %cst_70 [2] : vector<4x8x8xf32> to vector<4x8xf32>
    %181 = vector.shape_cast %180 : vector<4x8xf32> to vector<4x8x1xf32>
    %182 = vector.broadcast %181 : vector<4x8x1xf32> to vector<4x8x8xf32>
    %183 = arith.subf %179, %182 : vector<4x8x8xf32>
    %184 = math.exp %183 : vector<4x8x8xf32>
    %cst_71 = arith.constant dense<0.000000e+00> : vector<4x8xf32>
    %185 = vector.multi_reduction <add>, %184, %cst_71 [2] : vector<4x8x8xf32> to vector<4x8xf32>
    %186 = vector.shape_cast %185 : vector<4x8xf32> to vector<4x8x1xf32>
    %187 = tpu.reciprocal %186 {approx = true} : vector<4x8x1xf32> -> vector<4x8x1xf32>
    %188 = vector.broadcast %187 : vector<4x8x1xf32> to vector<4x8x8xf32>
    %189 = arith.mulf %184, %188 : vector<4x8x8xf32>
    %190 = arith.truncf %189 : vector<4x8x8xf32> to vector<4x8x8xbf16>
    %191 = arith.truncf %176 : vector<4x8x16xf32> to vector<4x8x16xbf16>
    "tpu.trace_start"() <{level = 10 : i32, message = "gqk,gkd->gqd"}> : () -> ()
    %cst_72 = arith.constant dense<0.000000e+00> : vector<4x8x16xf32>
    %192 = tpu.matmul %190, %191, %cst_72 {dimension_numbers = #tpu.dot_dimension_numbers<[2], [1], [1], [2], [0, 0, 0, 1, 1, 2], [0], [0]>} : vector<4x8x8xbf16>, vector<4x8x16xbf16>, vector<4x8x16xf32> -> vector<4x8x16xf32>
    "tpu.trace_stop"() : () -> ()
    %193 = vector.extract_strided_slice %192 {offsets = [0, 0, 0], sizes = [2, 8, 16], strides = [1, 1, 1]} : vector<4x8x16xf32> to vector<2x8x16xf32>
    %194 = vector.shape_cast %193 : vector<2x8x16xf32> to vector<16x16xf32>
    %195 = vector.extract_strided_slice %192 {offsets = [2, 0, 0], sizes = [2, 8, 16], strides = [1, 1, 1]} : vector<4x8x16xf32> to vector<2x8x16xf32>
    %196 = vector.shape_cast %195 : vector<2x8x16xf32> to vector<16x16xf32>
    %197 = tpu.concatenate %194, %196 in 1 : vector<16x16xf32>, vector<16x16xf32> -> vector<16x32xf32>
    %198 = arith.truncf %197 : vector<16x32xf32> to vector<16x32xbf16>
    %c1_73 = arith.constant 1 : index
    %c0_74 = arith.constant 0 : index
    %c0_75 = arith.constant 0 : index
    %199 = vector.load %arg5[%c1_73, %c0_74, %c0_75] : memref<2x32x32xbf16, #tpu.memory_space<vmem>>, vector<1x32x32xbf16>
    %200 = vector.shape_cast %199 : vector<1x32x32xbf16> to vector<32x32xbf16>
    %cst_76 = arith.constant dense<0.000000e+00> : vector<16x32xf32>
    %201 = tpu.matmul %198, %200, %cst_76 {dimension_numbers = #tpu.dot_dimension_numbers<[1], [0], [0], [1], [0, 0, 1, 1], [], []>} : vector<16x32xbf16>, vector<32x32xbf16>, vector<16x32xf32> -> vector<16x32xf32>
    %c1_77 = arith.constant 1 : index
    %c0_78 = arith.constant 0 : index
    %c0_79 = arith.constant 0 : index
    %202 = vector.load %arg6[%c1_77, %c0_78, %c0_79] : memref<2x1x32xf32, #tpu.memory_space<vmem>>, vector<1x1x32xf32>
    %203 = vector.shape_cast %202 : vector<1x1x32xf32> to vector<1x32xf32>
    %204 = vector.broadcast %203 : vector<1x32xf32> to vector<16x32xf32>
    %205 = arith.addf %201, %204 : vector<16x32xf32>
    %206 = arith.addf %130, %205 : vector<16x32xf32>
    %c1_80 = arith.constant 1 : index
    %c0_81 = arith.constant 0 : index
    %c0_82 = arith.constant 0 : index
    %207 = vector.load %arg7[%c1_80, %c0_81, %c0_82] : memref<2x1x32xf32, #tpu.memory_space<vmem>>, vector<1x1x32xf32>
    %208 = vector.shape_cast %207 : vector<1x1x32xf32> to vector<1x32xf32>
    %c1_83 = arith.constant 1 : index
    %c0_84 = arith.constant 0 : index
    %c0_85 = arith.constant 0 : index
    %209 = vector.load %arg8[%c1_83, %c0_84, %c0_85] : memref<2x1x32xf32, #tpu.memory_space<vmem>>, vector<1x1x32xf32>
    %210 = vector.shape_cast %209 : vector<1x1x32xf32> to vector<1x32xf32>
    %cst_86 = arith.constant dense<0.000000e+00> : vector<16xf32>
    %211 = vector.multi_reduction <add>, %206, %cst_86 [1] : vector<16x32xf32> to vector<16xf32>
    %212 = vector.shape_cast %211 : vector<16xf32> to vector<16x1xf32>
    %cst_87 = arith.constant 3.125000e-02 : f32
    %213 = vector.broadcast %cst_87 : f32 to vector<16x1xf32>
    %214 = arith.mulf %212, %213 : vector<16x1xf32>
    %215 = vector.broadcast %214 : vector<16x1xf32> to vector<16x32xf32>
    %216 = arith.subf %206, %215 : vector<16x32xf32>
    %217 = arith.mulf %216, %216 : vector<16x32xf32>
    %cst_88 = arith.constant dense<0.000000e+00> : vector<16xf32>
    %218 = vector.multi_reduction <add>, %217, %cst_88 [1] : vector<16x32xf32> to vector<16xf32>
    %219 = vector.shape_cast %218 : vector<16xf32> to vector<16x1xf32>
    %cst_89 = arith.constant 3.125000e-02 : f32
    %220 = vector.broadcast %cst_89 : f32 to vector<16x1xf32>
    %221 = arith.mulf %219, %220 : vector<16x1xf32>
    %cst_90 = arith.constant 9.99999974E-6 : f32
    %222 = vector.broadcast %cst_90 : f32 to vector<16x1xf32>
    %223 = arith.addf %221, %222 : vector<16x1xf32>
    %224 = math.rsqrt %223 : vector<16x1xf32>
    %225 = vector.broadcast %224 : vector<16x1xf32> to vector<16x32xf32>
    %226 = arith.mulf %216, %225 : vector<16x32xf32>
    %227 = vector.broadcast %208 : vector<1x32xf32> to vector<16x32xf32>
    %228 = arith.mulf %226, %227 : vector<16x32xf32>
    %229 = vector.broadcast %210 : vector<1x32xf32> to vector<16x32xf32>
    %230 = arith.addf %228, %229 : vector<16x32xf32>
    %231 = arith.truncf %230 : vector<16x32xf32> to vector<16x32xbf16>
    %c1_91 = arith.constant 1 : index
    %c0_92 = arith.constant 0 : index
    %c0_93 = arith.constant 0 : index
    %232 = vector.load %arg9[%c1_91, %c0_92, %c0_93] : memref<2x32x64xbf16, #tpu.memory_space<vmem>>, vector<1x32x64xbf16>
    %233 = vector.shape_cast %232 : vector<1x32x64xbf16> to vector<32x64xbf16>
    %cst_94 = arith.constant dense<0.000000e+00> : vector<16x64xf32>
    %234 = tpu.matmul %231, %233, %cst_94 {dimension_numbers = #tpu.dot_dimension_numbers<[1], [0], [0], [1], [0, 0, 1, 1], [], []>} : vector<16x32xbf16>, vector<32x64xbf16>, vector<16x64xf32> -> vector<16x64xf32>
    %c1_95 = arith.constant 1 : index
    %c0_96 = arith.constant 0 : index
    %c0_97 = arith.constant 0 : index
    %235 = vector.load %arg10[%c1_95, %c0_96, %c0_97] : memref<2x1x64xf32, #tpu.memory_space<vmem>>, vector<1x1x64xf32>
    %236 = vector.shape_cast %235 : vector<1x1x64xf32> to vector<1x64xf32>
    %237 = vector.broadcast %236 : vector<1x64xf32> to vector<16x64xf32>
    %238 = arith.addf %234, %237 : vector<16x64xf32>
    %cst_98 = arith.constant 5.000000e-01 : f32
    %239 = vector.broadcast %cst_98 : f32 to vector<16x64xf32>
    %240 = arith.mulf %239, %238 : vector<16x64xf32>
    %241 = arith.mulf %238, %238 : vector<16x64xf32>
    %242 = arith.mulf %241, %238 : vector<16x64xf32>
    %cst_99 = arith.constant 4.471500e-02 : f32
    %243 = vector.broadcast %cst_99 : f32 to vector<16x64xf32>
    %244 = arith.mulf %243, %242 : vector<16x64xf32>
    %245 = arith.addf %238, %244 : vector<16x64xf32>
    %cst_100 = arith.constant 0.797884583 : f32
    %246 = vector.broadcast %cst_100 : f32 to vector<16x64xf32>
    %247 = arith.mulf %246, %245 : vector<16x64xf32>
    %248 = math.tanh %247 : vector<16x64xf32>
    %cst_101 = arith.constant 1.000000e+00 : f32
    %249 = vector.broadcast %cst_101 : f32 to vector<16x64xf32>
    %250 = arith.addf %249, %248 : vector<16x64xf32>
    %251 = arith.mulf %240, %250 : vector<16x64xf32>
    %252 = arith.truncf %251 : vector<16x64xf32> to vector<16x64xbf16>
    %c1_102 = arith.constant 1 : index
    %c0_103 = arith.constant 0 : index
    %c0_104 = arith.constant 0 : index
    %253 = vector.load %arg11[%c1_102, %c0_103, %c0_104] : memref<2x64x32xbf16, #tpu.memory_space<vmem>>, vector<1x64x32xbf16>
    %254 = vector.shape_cast %253 : vector<1x64x32xbf16> to vector<64x32xbf16>
    %cst_105 = arith.constant dense<0.000000e+00> : vector<16x32xf32>
    %255 = tpu.matmul %252, %254, %cst_105 {dimension_numbers = #tpu.dot_dimension_numbers<[1], [0], [0], [1], [0, 0, 1, 1], [], []>} : vector<16x64xbf16>, vector<64x32xbf16>, vector<16x32xf32> -> vector<16x32xf32>
    %c1_106 = arith.constant 1 : index
    %c0_107 = arith.constant 0 : index
    %c0_108 = arith.constant 0 : index
    %256 = vector.load %arg12[%c1_106, %c0_107, %c0_108] : memref<2x1x32xf32, #tpu.memory_space<vmem>>, vector<1x1x32xf32>
    %257 = vector.shape_cast %256 : vector<1x1x32xf32> to vector<1x32xf32>
    %258 = vector.broadcast %257 : vector<1x32xf32> to vector<16x32xf32>
    %259 = arith.addf %255, %258 : vector<16x32xf32>
    %260 = arith.addf %206, %259 : vector<16x32xf32>
    %c0_109 = arith.constant 0 : index
    %c0_110 = arith.constant 0 : index
    %261 = vector.load %arg13[%c0_109, %c0_110] : memref<16x32xf32, #tpu.memory_space<vmem>>, vector<16x32xf32>
    tpu.vector_store %arg13[%c0_109, %c0_110], %260 {strides = array<i32>} : memref<16x32xf32, #tpu.memory_space<vmem>>, vector<16x32xf32>,
    return
  }
  func.func @transform_0(%arg0: i32) -> (i32, i32) {
    %c0_i32 = arith.constant 0 : i32
    %c0_i32_0 = arith.constant 0 : i32
    %c0_i32_1 = arith.constant 0 : i32
    return %c0_i32, %c0_i32_0 : i32, i32
  }
  func.func @transform_1(%arg0: i32) -> (i32, i32, i32) {
    %c0_i32 = arith.constant 0 : i32
    %c0_i32_0 = arith.constant 0 : i32
    %c0_i32_1 = arith.constant 0 : i32
    %c0_i32_2 = arith.constant 0 : i32
    return %c0_i32, %c0_i32_0, %c0_i32_1 : i32, i32, i32
  }
  func.func @transform_2(%arg0: i32) -> (i32, i32, i32) {
    %c0_i32 = arith.constant 0 : i32
    %c0_i32_0 = arith.constant 0 : i32
    %c0_i32_1 = arith.constant 0 : i32
    %c0_i32_2 = arith.constant 0 : i32
    return %c0_i32, %c0_i32_0, %c0_i32_1 : i32, i32, i32
  }
  func.func @transform_3(%arg0: i32) -> (i32, i32, i32) {
    %c0_i32 = arith.constant 0 : i32
    %c0_i32_0 = arith.constant 0 : i32
    %c0_i32_1 = arith.constant 0 : i32
    %c0_i32_2 = arith.constant 0 : i32
    return %c0_i32, %c0_i32_0, %c0_i32_1 : i32, i32, i32
  }
  func.func @transform_4(%arg0: i32) -> (i32, i32, i32) {
    %c0_i32 = arith.constant 0 : i32
    %c0_i32_0 = arith.constant 0 : i32
    %c0_i32_1 = arith.constant 0 : i32
    %c0_i32_2 = arith.constant 0 : i32
    return %c0_i32, %c0_i32_0, %c0_i32_1 : i32, i32, i32
  }
  func.func @transform_5(%arg0: i32) -> (i32, i32, i32) {
    %c0_i32 = arith.constant 0 : i32
    %c0_i32_0 = arith.constant 0 : i32
    %c0_i32_1 = arith.constant 0 : i32
    %c0_i32_2 = arith.constant 0 : i32
    return %c0_i32, %c0_i32_0, %c0_i32_1 : i32, i32, i32
  }
  func.func @transform_6(%arg0: i32) -> (i32, i32, i32) {
    %c0_i32 = arith.constant 0 : i32
    %c0_i32_0 = arith.constant 0 : i32
    %c0_i32_1 = arith.constant 0 : i32
    %c0_i32_2 = arith.constant 0 : i32
    return %c0_i32, %c0_i32_0, %c0_i32_1 : i32, i32, i32
  }
  func.func @transform_7(%arg0: i32) -> (i32, i32, i32) {
    %c0_i32 = arith.constant 0 : i32
    %c0_i32_0 = arith.constant 0 : i32
    %c0_i32_1 = arith.constant 0 : i32
    %c0_i32_2 = arith.constant 0 : i32
    return %c0_i32, %c0_i32_0, %c0_i32_1 : i32, i32, i32
  }
  func.func @transform_8(%arg0: i32) -> (i32, i32, i32) {
    %c0_i32 = arith.constant 0 : i32
    %c0_i32_0 = arith.constant 0 : i32
    %c0_i32_1 = arith.constant 0 : i32
    %c0_i32_2 = arith.constant 0 : i32
    return %c0_i32, %c0_i32_0, %c0_i32_1 : i32, i32, i32
  }
  func.func @transform_9(%arg0: i32) -> (i32, i32, i32) {
    %c0_i32 = arith.constant 0 : i32
    %c0_i32_0 = arith.constant 0 : i32
    %c0_i32_1 = arith.constant 0 : i32
    %c0_i32_2 = arith.constant 0 : i32
    return %c0_i32, %c0_i32_0, %c0_i32_1 : i32, i32, i32
  }
  func.func @transform_10(%arg0: i32) -> (i32, i32, i32) {
    %c0_i32 = arith.constant 0 : i32
    %c0_i32_0 = arith.constant 0 : i32
    %c0_i32_1 = arith.constant 0 : i32
    %c0_i32_2 = arith.constant 0 : i32
    return %c0_i32, %c0_i32_0, %c0_i32_1 : i32, i32, i32
  }
  func.func @transform_11(%arg0: i32) -> (i32, i32, i32) {
    %c0_i32 = arith.constant 0 : i32
    %c0_i32_0 = arith.constant 0 : i32
    %c0_i32_1 = arith.constant 0 : i32
    %c0_i32_2 = arith.constant 0 : i32
    return %c0_i32, %c0_i32_0, %c0_i32_1 : i32, i32, i32
  }
  func.func @transform_12(%arg0: i32) -> (i32, i32) {
    %c0_i32 = arith.constant 0 : i32
    %c0_i32_0 = arith.constant 0 : i32
    %c0_i32_1 = arith.constant 0 : i32
    return %c0_i32, %c0_i32_0 : i32, i32
  }
}

</mosaic_0001>

<bundles_post_ra>
// kernel: transformer_forward.1
= control target key start
LH: loop header
LB: loop body
LE: loop exit
PB: predicated region body
PF: predicated region fallthrough
CT: control target
= control target key end

     0   :  { %17 = vsyncpa [#allocation3], 0  ;;  %s2808_s0 = inlined_call_operand.hbm [shape: f32[16,32], index: 0, kind: input, shape index: {}]   ;;  %s2809_s1 = inlined_call_operand.vmem [shape: f32[2,1,32], index: 1, kind: input, shape index: {}]   ;;  %s2810_s2 = inlined_call_operand.hbm [shape: f32[2,1,32], index: 2, kind: input, shape index: {}]   ;;  %s2811_s3 = inlined_call_operand.vmem [shape: bf16[2,32,96], index: 3, kind: input, shape index: {}]   ;;  %s2812_s4 = inlined_call_operand.vmem [shape: bf16[2,32,32], index: 4, kind: input, shape index: {}]   ;;  %s2813_s5 = inlined_call_operand.vmem [shape: f32[2,1,32], index: 5, kind: input, shape index: {}]   ;;  %s2814_s6 = inlined_call_operand.vmem [shape: f32[2,1,32], index: 6, kind: input, shape index: {}]   ;;  %s2815_s7 = inlined_call_operand.vmem [shape: f32[2,1,32], index: 7, kind: input, shape index: {}]   ;;  %s2816_s8 = inlined_call_operand.vmem [shape: bf16[2,32,64], index: 8, kind: input, shape index: {}]   ;;  %s2817_s9 = inlined_call_operand.hbm [shape: f32[2,1,64], index: 9, kind: input, shape index: {}]   ;;  %s2818_s10 = inlined_call_operand.vmem [shape: bf16[2,64,32], index: 10, kind: input, shape index: {}]   ;;  %s2819_s11 = inlined_call_operand.hbm [shape: f32[2,1,32], index: 11, kind: input, shape index: {}]   ;;  %s2820_s12 = inlined_call_operand.hbm [shape: f32[16,32], index: 12, kind: output, shape index: {}]  }
   0x1   :  { %18 = vsyncpa [#allocation6], 0 }
   0x2   :  { %19 = vsyncpa [#allocation9], 0 }
   0x3   :  { %20 = vsyncpa [#allocation4], 0  ;;  %s2363_s21 = smov [#allocation5]  }
   0x4   :  { %s40_s22 = sshll.u32 %s2363_s21, 4  ;;  %s41_s22 = int_to_ptr.vmem [resolvable:$true] %s40_s22 }
   0x5   :  { %s2263_s23 = scalar_lea.vmem %s41_s22, 32  ;;  %p2268_p1 = scmp.lt.s32.totalorder %s41_s22, %s41_s22 }
   0x6   :  { %p2264_p0 = scmp.ne.s32.totalorder %s41_s22, %s2263_s23  ;;  %p2269_p2 = scmp.lt.s32.totalorder %s2263_s23, %s2263_s23 }
   0x8   :  { %p2270_p3 = por %p2269_p2, %p2268_p1 }
   0xa   :  { %p2271_p4 = pnand %p2270_p3, %p2264_p0 }
   0xc   :  { %2274 = shalt.err (!%p2271_p4)
}
   0xd   :  { %s2364_s24 = smov 16   ;;  %s2365_s25 = smov 1  }
   0xe   :  { %46 = dma.hbm_to_vmem [thread:$0]  %s2810_s2, 32, %s41_s22, [#allocation6], %s2364_s24, %s2364_s24, %s2365_s25  }
   0xf   :  { %s2366_s28 = smov [#allocation2]  }
  0x10   :  { %s26_s29 = sshll.u32 %s2366_s28, 4  ;;  %s27_s29 = int_to_ptr.vmem [resolvable:$true] %s26_s29 }
  0x11   :  { %s2283_s30 = scalar_lea.vmem %s27_s29, 256  ;;  %p2288_p6 = scmp.lt.s32.totalorder %s27_s29, %s27_s29 }
  0x12   :  { %p2284_p5 = scmp.ne.s32.totalorder %s27_s29, %s2283_s30  ;;  %p2289_p7 = scmp.lt.s32.totalorder %s2283_s30, %s2283_s30 }
  0x14   :  { %p2290_p8 = por %p2289_p7, %p2288_p6 }
  0x16   :  { %p2291_p9 = pnand %p2290_p8, %p2284_p5 }
  0x18   :  { %2294 = shalt.err (!%p2291_p9)
}
  0x19   :  { %s2367_s13 = smov 128   ;;  %s2368_s14 = smov 8  }
  0x1a   :  { %32 = dma.hbm_to_vmem [thread:$0]  %s2808_s0, 256, %s27_s29, [#allocation3], %s2367_s13, %s2367_s13, %s2368_s14  }
  0x1b   :  { %s2369_s2 = smov [#allocation7]   ;;  %s2370_s18 = smov [#allocation8]  }
  0x1c   :  { %s64_s17 = sshll.u32 %s2369_s2, 4  ;;  %s78_s19 = sshll.u32 %s2370_s18, 4  ;;  %s65_s17 = int_to_ptr.vmem [resolvable:$true] %s64_s17  ;;  %s79_s19 = int_to_ptr.vmem [resolvable:$true] %s78_s19 }
  0x1d   :  { %s2303_s20 = scalar_lea.vmem %s65_s17, 32  ;;  %p2308_p11 = scmp.lt.s32.totalorder %s65_s17, %s65_s17 }
  0x1e   :  { %p2304_p10 = scmp.ne.s32.totalorder %s65_s17, %s2303_s20  ;;  %p2309_p12 = scmp.lt.s32.totalorder %s2303_s20, %s2303_s20 }
  0x20   :  { %p2310_p13 = por %p2309_p12, %p2308_p11 }
  0x22   :  { %p2311_p0 = pnand %p2310_p13, %p2304_p10 }
  0x24   :  { %2314 = shalt.err (!%p2311_p0)
}
  0x25   :  { %70 = dma.hbm_to_vmem [thread:$0]  %s2817_s9, 32, %s65_s17, [#allocation6], %s2364_s24, %s2364_s24, %s2365_s25  }
  0x26   :  { %s2323_s0 = scalar_lea.vmem %s79_s19, 32  ;;  %p2328_p2 = scmp.lt.s32.totalorder %s79_s19, %s79_s19 }
  0x27   :  { %p2324_p1 = scmp.ne.s32.totalorder %s79_s19, %s2323_s0  ;;  %p2329_p3 = scmp.lt.s32.totalorder %s2323_s0, %s2323_s0 }
  0x29   :  { %p2330_p4 = por %p2329_p3, %p2328_p2 }
  0x2b   :  { %p2331_p5 = pnand %p2330_p4, %p2324_p1 }
  0x2d   :  { %2334 = shalt.err (!%p2331_p5)
}
  0x2e   :  { %84 = dma.hbm_to_vmem [thread:$0]  %s2819_s11, 32, %s79_s19, [#allocation9], %s2364_s24, %s2364_s24, %s2365_s25  }
  0x2f   :  { %2355 = dma.done.wait [#allocation3], 256  }
  0x30   :  { %2356 = vsyncadd [#allocation3], 4294967040 }
  0x31   :  { %2357 = dma.done.wait [#allocation6], 64  }
  0x32   :  { %2358 = vsyncadd [#allocation6], 4294967232 }
  0x33   :  { %2359 = dma.done.wait [#allocation9], 32  }
  0x34   :  { %2360 = vsyncadd [#allocation9], 4294967264  ;;  %vm102_vm0 = vcmask 261120   ;;  %v2466_v0 = vld [vmem:[#allocation2] sm:$0xff]  ;;  %v2468_v1 = vld [vmem:[#allocation2 + $0x8] sm:$0xff]  ;;  %v2371_v15 = vmov 0.0  }
  0x35   :  { %v103_v2 = vsel %vm102_vm0, %v2466_v0, 0.0  ;;  %v106_v3 = vsel %vm102_vm0, %v2468_v1, 0.0  ;;  %v2179_v14 = vld [vmem:[%s2811_s3 + $0x8] sm:$0xff]   ;;  %1977 = vmatprep.subr.bf16.mxu1 %v2371_v15  ;;  %vm2372_vm1 = vmmov 0   ;;  %v2180_v16 = vld [vmem:[%s2811_s3] sm:$0xff]   ;;  %1991 = vmatprep.subr.bf16.mxu0 %v2371_v15  ;;  %s2373_s30 = smov 96  }
  0x36   :  { %104 = vadd.xlane.f32.xlu0 %v103_v2  ;;  %1981 = vmatprep.mubr.msk.bf16.mxu1 %vm2372_vm1, %v2371_v15  ;;  %v1835_v25 = vld [vmem:[%s2809_s1] ss:$0 sm:$0xff]  ;;  %v1836_v29 = vld [vmem:[#allocation5] ss:$0 sm:$0xff]  ;;  %s2374_s15 = smov 112   ;;  %vm221_vm2 = vcmask 130048  }
  0x37   :  { %1978 = vmatpush3.bf16.msra.mxu1 %v2179_v14  ;;  %1993 = vmatprep.mubr.msk.bf16.mxu0 %vm2372_vm1, %v2371_v15  ;;  %vm415_vm3 = vcmask 64512   ;;  %s2375_s16 = smov 64   ;;  %vm469_vm4 = vcmask 1043456   ;;  %vm907_vm5 = vcmask 523264  }
  0x38   :  { %1979 = vmatprep.subr.bf16.mxu1 %v2371_v15 }
  0x3a   :  { %107 = vadd.xlane.f32.xlu0 %v106_v3 }
  0x3b   :  { %1980 = vmatpush3.bf16.msra.mxu1 %v2180_v16 }
  0x3c   :  { %1985 = vmatprep.subr.bf16.mxu1 %v2371_v15 }
  0xbf   :  { %v105_v4 = vpop.xlane.xlu0 %104 }
  0xc0   :  { %v109_v5 = vmul.f32 0.03125, %v105_v4 }
  0xc2   :  { %v111_v6 = vsub.f32 %v2466_v0, %v109_v5 }
  0xc3   :  { %v108_v7 = vpop.xlane.xlu0 %107 }
  0xc4   :  { %v110_v8 = vmul.f32 0.03125, %v108_v7  ;;  %v113_v9 = vmul.f32 %v111_v6, %v111_v6 }
  0xc6   :  { %v112_v10 = vsub.f32 %v2468_v1, %v110_v8  ;;  %v115_v11 = vsel %vm102_vm0, %v113_v9, 0.0 }
  0xc7   :  { %116 = vadd.xlane.f32.xlu1 %v115_v11 }
  0xc8   :  { %v114_v12 = vmul.f32 %v112_v10, %v112_v10 }
  0xca   :  { %v118_v13 = vsel %vm102_vm0, %v114_v12, 0.0 }
  0xcb   :  { %119 = vadd.xlane.f32.xlu1 %v118_v13 }
 0x150   :  { %v117_v17 = vpop.xlane.xlu1 %116 }
 0x151   :  { %v121_v18 = vmul.f32 0.03125, %v117_v17 }
 0x153   :  { %v123_v19 = vadd.f32 1e-05, %v121_v18 }
 0x154   :  { %v120_v20 = vpop.xlane.xlu1 %119 }
 0x155   :  { %2199 = vrsqrt.f32 %v123_v19  ;;  %v122_v21 = vmul.f32 0.03125, %v120_v20 }
 0x157   :  { %v124_v22 = vadd.f32 1e-05, %v122_v21 }
 0x159   :  { %2201 = vrsqrt.f32 %v124_v22 }
 0x162   :  { %v2200_v23 = vpop.eup %2199 }
 0x163   :  { %v127_v24 = vmul.f32 %v2200_v23, %v111_v6 }
 0x165   :  { %v135_v28 = vmul.f32 %v1835_v25, %v127_v24 }
 0x166   :  { %v2202_v26 = vpop.eup %2201 }
 0x167   :  { %v128_v27 = vmul.f32 %v2202_v26, %v112_v10  ;;  %v143_v31 = vadd.f32 %v1836_v29, %v135_v28 }
 0x169   :  { %v136_v30 = vmul.f32 %v1835_v25, %v128_v27 }
 0x16b   :  { %v144_v32 = vadd.f32 %v1836_v29, %v136_v30 }
 0x16d   :  { %v145_v33 = vpack.c.bf16 %v144_v32, %v143_v31 }
 0x16f   :  { %1982 = vmatmul.mubr.msk.bf16.vlgmr.msra.gmra.mxu1 %vm102_vm0, %v145_v33 }
 0x170   :  { %1987 = vmatprep.mubr.msk.bf16.mxu1 %vm2372_vm1, %v2371_v15 }
 0x22f   :  { %v199_v34 = vpop.f32.mrf.mxu1 }
 0x230   :  { %v214_v35 = vpack.c.bf16 %v199_v34, %v199_v34 }
 0x231   :  { %v1983_v36 = vpop.f32.mrf.mxu1 }
 0x232   :  { %219 = vrot.lane.b32.xlu1 %v214_v35, %s2373_s30 }
 0x233   :  { %v202_v37 = vpop.f32.mrf.mxu1 }
 0x234   :  { %v2159_v38 = vpack.i.bf16 %v202_v37, %v199_v34  ;;  %v2499_v39 = vpack.c.bf16 %v202_v37, %v202_v37 }
 0x235   :  { %v1984_v40 = vpop.f32.mrf.mxu1 }
 0x236   :  { %2160 = vrot.lane.b32.xlu0 %v2159_v38, %s2374_s15  ;;  %269 = vrot.lane.b32.xlu1 %v2499_v39, %s2373_s30 }
 0x2a4   :  { %v220_v41 = vpop.permute.xlu1 %219 }
 0x2a5   :  { %v226_v42 = vsel %vm221_vm2, %v220_v41, 0 }
 0x2a6   :  { %1986 = vmatpush3.bf16.xpose.msra.mxu1 %v226_v42 }
 0x2a7   :  { %1997 = vmatprep.subr.bf16.mxu1 %v2371_v15 }
 0x2a8   :  { %v2161_v43 = vpop.permute.xlu0 %2160  ;;  %v270_v44 = vpop.permute.xlu1 %269 }
 0x2a9   :  { %v2163_v45 = vunpack.i.h.bf16 %v2161_v43  ;;  %v2162_v46 = vunpack.i.l.bf16 %v2161_v43  ;;  %v275_v47 = vsel %vm221_vm2, %v270_v44, 0 }
 0x2aa   :  { %1992 = vmatpush3.bf16.xpose.msra.mxu0 %v275_v47 }
 0x2ab   :  { %v2507_v48 = vpack.c.bf16 %v2163_v45, %v2163_v45  ;;  %v2509_v49 = vpack.c.bf16 %v2162_v46, %v2162_v46  ;;  %2003 = vmatprep.subr.bf16.mxu0 %v2371_v15 }
 0x2ad   :  { %1988 = vmatmul.mubr.msk.bf16.vlgmr.msra.gmra.mxu1 %vm221_vm2, %v214_v35  ;;  %367 = vrot.lane.b32.xlu0 %v2507_v48, %s2373_s30 }
 0x2ae   :  { %318 = vrot.lane.b32.xlu1 %v2509_v49, %s2373_s30  ;;  %1999 = vmatprep.mubr.msk.bf16.mxu1 %vm2372_vm1, %v2371_v15 }
 0x2b1   :  { %1994 = vmatmul.mubr.msk.bf16.vlgmr.msra.gmra.mxu0 %vm221_vm2, %v2499_v39 }
 0x2b2   :  { %2005 = vmatprep.mubr.msk.bf16.mxu0 %vm2372_vm1, %v2371_v15 }
 0x31f   :  { %v368_v50 = vpop.permute.xlu0 %367 }
 0x320   :  { %v373_v51 = vsel %vm221_vm2, %v368_v50, 0  ;;  %v319_v52 = vpop.permute.xlu1 %318 }
 0x321   :  { %v324_v53 = vsel %vm221_vm2, %v319_v52, 0  ;;  %2004 = vmatpush3.bf16.xpose.msra.mxu0 %v373_v51 }
 0x322   :  { %1998 = vmatpush3.bf16.xpose.msra.mxu1 %v324_v53  ;;  %2015 = vmatprep.subr.bf16.mxu0 %v2371_v15 }
 0x323   :  { %2009 = vmatprep.subr.bf16.mxu1 %v2371_v15 }
 0x328   :  { %2006 = vmatmul.mubr.msk.bf16.vlgmr.msra.gmra.mxu0 %vm221_vm2, %v2507_v48 }
 0x329   :  { %2000 = vmatmul.mubr.msk.bf16.vlgmr.msra.gmra.mxu1 %vm221_vm2, %v2509_v49  ;;  %2017 = vmatprep.mubr.msk.bf16.mxu0 %vm2372_vm1, %v2371_v15 }
 0x32a   :  { %2011 = vmatprep.mubr.msk.bf16.mxu1 %vm2372_vm1, %v2371_v15 }
 0x36d   :  { %v262_v54 = vpop.f32.mrf.mxu1 }
 0x36e   :  { %v416_v55 = vsel %vm415_vm3, %v262_v54, -inf }
 0x36f   :  { %417 = vmax.xlane.f32.xlu1 %v416_v55  ;;  %v1989_v56 = vpop.f32.mrf.mxu1 }
 0x371   :  { %v265_v57 = vpop.f32.mrf.mxu1  ;;  %v311_v58 = vpop.f32.mrf.mxu0 }
 0x372   :  { %v419_v59 = vsel %vm415_vm3, %v311_v58, -inf }
 0x373   :  { %420 = vmax.xlane.f32.xlu0 %v419_v59  ;;  %v1990_v60 = vpop.f32.mrf.mxu1  ;;  %v1995_v61 = vpop.f32.mrf.mxu0 }
 0x374   :  { %v2181_v61 = vld [vmem:[%s2812_s4 + $0x8] sm:$0xff]  }
 0x375   :  { %v314_v62 = vpop.f32.mrf.mxu0 }
 0x377   :  { %v1996_v63 = vpop.f32.mrf.mxu0 }
 0x378   :  { %v2182_v63 = vld [vmem:[%s2812_s4] sm:$0xff]  }
 0x380   :  { %464 = vrot.lane.b32.xlu1 %v214_v35, %s2375_s16 }
 0x3e8   :  { %v409_v2 = vpop.f32.mrf.mxu0 }
 0x3e9   :  { %v360_v3 = vpop.f32.mrf.mxu1  ;;  %v425_v10 = vsel %vm415_vm3, %v409_v2, -inf }
 0x3ea   :  { %v2007_v4 = vpop.f32.mrf.mxu0  ;;  %v422_v5 = vsel %vm415_vm3, %v360_v3, -inf }
 0x3eb   :  { %423 = vmax.xlane.f32.xlu0 %v422_v5  ;;  %v2001_v6 = vpop.f32.mrf.mxu1 }
 0x3ec   :  { %v412_v7 = vpop.f32.mrf.mxu0 }
 0x3ed   :  { %v363_v8 = vpop.f32.mrf.mxu1 }
 0x3ee   :  { %v2008_v9 = vpop.f32.mrf.mxu0 }
 0x3ef   :  { %426 = vmax.xlane.f32.xlu0 %v425_v10  ;;  %v2002_v11 = vpop.f32.mrf.mxu1 }
 0x3f8   :  { %v418_v12 = vpop.xlane.xlu1 %417 }
 0x3f9   :  { %v428_v13 = vsub.f32 %v262_v54, %v418_v12 }
 0x3fb   :  { %v432_v14 = vmul.f32 1.442695, %v428_v13 }
 0x3fc   :  { %v421_v16 = vpop.xlane.xlu0 %420  ;;  %v465_v17 = vpop.permute.xlu1 %464 }
 0x3fd   :  { %2203 = vpow2.f32 %v432_v14  ;;  %v429_v18 = vsub.f32 %v311_v58, %v421_v16  ;;  %v471_v19 = vsel %vm469_vm4, %v465_v17, 0 }
 0x3fe   :  { %2010 = vmatpush3.bf16.msra.mxu1 %v471_v19 }
 0x3ff   :  { %v434_v20 = vmul.f32 1.442695, %v429_v18  ;;  %2021 = vmatprep.subr.bf16.mxu1 %v2371_v15 }
 0x401   :  { %2205 = vpow2.f32 %v434_v20 }
 0x40a   :  { %v2204_v21 = vpop.eup %2203 }
 0x40b   :  { %v440_v22 = vsel %vm415_vm3, %v2204_v21, 0.0 }
 0x40c   :  { %441 = vadd.xlane.f32.xlu1 %v440_v22 }
 0x40e   :  { %v2206_v23 = vpop.eup %2205 }
 0x40f   :  { %v443_v24 = vsel %vm415_vm3, %v2206_v23, 0.0 }
 0x410   :  { %444 = vadd.xlane.f32.xlu0 %v443_v24 }
 0x474   :  { %v424_v25 = vpop.xlane.xlu0 %423 }
 0x475   :  { %v430_v26 = vsub.f32 %v360_v3, %v424_v25 }
 0x477   :  { %v436_v27 = vmul.f32 1.442695, %v430_v26 }
 0x478   :  { %v427_v28 = vpop.xlane.xlu0 %426 }
 0x479   :  { %2207 = vpow2.f32 %v436_v27  ;;  %v431_v29 = vsub.f32 %v409_v2, %v427_v28 }
 0x47b   :  { %v438_v30 = vmul.f32 1.442695, %v431_v29 }
 0x47d   :  { %2209 = vpow2.f32 %v438_v30 }
 0x486   :  { %v2208_v31 = vpop.eup %2207 }
 0x487   :  { %v446_v32 = vsel %vm415_vm3, %v2208_v31, 0.0 }
 0x488   :  { %447 = vadd.xlane.f32.xlu1 %v446_v32 }
 0x48a   :  { %v2210_v33 = vpop.eup %2209 }
 0x48b   :  { %v449_v34 = vsel %vm415_vm3, %v2210_v33, 0.0 }
 0x48c   :  { %450 = vadd.xlane.f32.xlu0 %v449_v34 }
 0x495   :  { %v442_v35 = vpop.xlane.xlu1 %441 }
 0x496   :  { %2211 = vrcp.f32 %v442_v35 }
 0x499   :  { %561 = vrot.lane.b32.xlu1 %v2509_v49, %s2375_s16  ;;  %v445_v40 = vpop.xlane.xlu0 %444 }
 0x49a   :  { %2213 = vrcp.f32 %v445_v40 }
 0x49d   :  { %609 = vrot.lane.b32.xlu1 %v2507_v48, %s2375_s16 }
 0x4a2   :  { %513 = vrot.lane.b32.xlu0 %v2499_v39, %s2375_s16 }
 0x4a3   :  { %v2212_v36 = vpop.eup %2211 }
 0x4a4   :  { %v456_v37 = vmul.f32 %v2212_v36, %v2204_v21  ;;  %v1848_v21 = vld [vmem:[%s2813_s5] ss:$0 sm:$0xff] }
 0x4a6   :  { %v460_v38 = vpack.c.bf16 %v456_v37, %v456_v37 }
 0x4a7   :  { %v2214_v42 = vpop.eup %2213 }
 0x4a8   :  { %2012 = vmatmul.mubr.msk.bf16.vlgmr.msra.gmra.mxu1 %vm415_vm3, %v460_v38  ;;  %v457_v39 = vmul.f32 %v2214_v42, %v2206_v23  ;;  %v2184_v42 = vld [vmem:[%s2816_s8] sm:$0xff]  }
 0x4a9   :  { %2023 = vmatprep.mubr.msk.bf16.mxu1 %vm2372_vm1, %v2371_v15 }
 0x4aa   :  { %v461_v49 = vpack.c.bf16 %v457_v39, %v457_v39 }
 0x511   :  { %v448_v41 = vpop.xlane.xlu1 %447 }
 0x512   :  { %2215 = vrcp.f32 %v448_v41  ;;  %v2183_v41 = vld [vmem:[%s2816_s8 + $0x8] sm:$0xff]  }
 0x515   :  { %v562_v43 = vpop.permute.xlu1 %561  ;;  %v451_v44 = vpop.xlane.xlu0 %450 }
 0x516   :  { %v567_v45 = vsel %vm469_vm4, %v562_v43, 0  ;;  %2217 = vrcp.f32 %v451_v44 }
 0x517   :  { %2022 = vmatpush3.bf16.msra.mxu1 %v567_v45 }
 0x518   :  { %2033 = vmatprep.subr.bf16.mxu1 %v2371_v15 }
 0x519   :  { %v514_v46 = vpop.permute.xlu0 %513  ;;  %v610_v48 = vpop.permute.xlu1 %609 }
 0x51a   :  { %v519_v47 = vsel %vm469_vm4, %v514_v46, 0  ;;  %v615_v50 = vsel %vm469_vm4, %v610_v48, 0 }
 0x51b   :  { %2016 = vmatpush3.bf16.msra.mxu0 %v519_v47 }
 0x51c   :  { %2027 = vmatprep.subr.bf16.mxu0 %v2371_v15 }
 0x51e   :  { %2018 = vmatmul.mubr.msk.bf16.vlgmr.msra.gmra.mxu0 %vm415_vm3, %v461_v49 }
 0x51f   :  { %v2216_v51 = vpop.eup %2215  ;;  %2028 = vmatpush3.bf16.msra.mxu0 %v615_v50  ;;  %2029 = vmatprep.mubr.msk.bf16.mxu0 %vm2372_vm1, %v2371_v15  ;;  %v1852_v50 = vld [vmem:[%s2814_s6] ss:$0 sm:$0xff] }
 0x520   :  { %v458_v52 = vmul.f32 %v2216_v51, %v2208_v31  ;;  %2041 = vmatprep.subr.bf16.mxu0 %v2371_v15 }
 0x522   :  { %v462_v53 = vpack.c.bf16 %v458_v52, %v458_v52 }
 0x523   :  { %v2218_v54 = vpop.eup %2217 }
 0x524   :  { %2024 = vmatmul.mubr.msk.bf16.vlgmr.msra.gmra.mxu1 %vm415_vm3, %v462_v53  ;;  %v459_v55 = vmul.f32 %v2218_v54, %v2210_v33  ;;  %v1853_v54 = vld [vmem:[%s2815_s7] ss:$0 sm:$0xff] }
 0x525   :  { %2037 = vmatprep.mubr.msk.bf16.mxu1 %vm2372_vm1, %v2371_v15  ;;  %2034 = vmatpush3.bf16.msra.mxu1 %v2181_v61  ;;  %v2187_v61 = vld [vmem:[%s2818_s10 + $0x8] sm:$0xff]  }
 0x526   :  { %v463_v56 = vpack.c.bf16 %v459_v55, %v459_v55  ;;  %2035 = vmatprep.subr.bf16.mxu1 %v2371_v15 }
 0x528   :  { %2030 = vmatmul.mubr.msk.bf16.vlgmr.msra.gmra.mxu0 %vm415_vm3, %v463_v56 }
 0x529   :  { %2045 = vmatprep.mubr.msk.bf16.mxu0 %vm2372_vm1, %v2371_v15  ;;  %2036 = vmatpush3.bf16.msra.mxu1 %v2182_v63  ;;  %v1854_v63 = vld [vmem:[#allocation7] ss:$0 sm:$0xff] }
 0x52a   :  { %2049 = vmatprep.subr.bf16.mxu1 %v2371_v15  ;;  %2042 = vmatpush3.bf16.msra.mxu0 %v2183_v41 }
 0x52b   :  { %2043 = vmatprep.subr.bf16.mxu0 %v2371_v15 }
 0x52e   :  { %2044 = vmatpush3.bf16.msra.mxu0 %v2184_v42 }
 0x52f   :  { %2061 = vmatprep.subr.bf16.mxu0 %v2371_v15 }
 0x568   :  { %v507_v57 = vpop.f32.mrf.mxu1 }
 0x56a   :  { %v2013_v58 = vpop.f32.mrf.mxu1 }
 0x56c   :  { %v510_v59 = vpop.f32.mrf.mxu1 }
 0x56d   :  { %v2185_v59 = vld [vmem:[%s2818_s10 + $0x18] sm:$0xff]  }
 0x56e   :  { %v2014_v60 = vpop.f32.mrf.mxu1 }
 0x56f   :  { %v2186_v60 = vld [vmem:[%s2818_s10 + $0x10] sm:$0xff]  }
 0x5de   :  { %v555_v62 = vpop.f32.mrf.mxu0 }
 0x5e0   :  { %v2019_v2 = vpop.f32.mrf.mxu0 }
 0x5e2   :  { %v558_v3 = vpop.f32.mrf.mxu0 }
 0x5e4   :  { %v2020_v4 = vpop.f32.mrf.mxu0  ;;  %v603_v5 = vpop.f32.mrf.mxu1 }
 0x5e6   :  { %v2025_v6 = vpop.f32.mrf.mxu1 }
 0x5e8   :  { %v606_v7 = vpop.f32.mrf.mxu1  ;;  %v651_v8 = vpop.f32.mrf.mxu0 }
 0x5e9   :  { %v2164_v9 = vpack.i.bf16 %v651_v8, %v603_v5 }
 0x5ea   :  { %v2026_v10 = vpop.f32.mrf.mxu1  ;;  %v2031_v11 = vpop.f32.mrf.mxu0 }
 0x5eb   :  { %2165 = vrot.lane.b32.xlu1 %v2164_v9, %s2364_s24 }
 0x5ec   :  { %v654_v12 = vpop.f32.mrf.mxu0 }
 0x5ee   :  { %v2032_v13 = vpop.f32.mrf.mxu0 }
 0x65d   :  { %v2166_v14 = vpop.permute.xlu1 %2165 }
 0x65e   :  { %v2168_v16 = vunpack.i.h.bf16 %v2166_v14  ;;  %v2167_v17 = vunpack.i.l.bf16 %v2166_v14 }
 0x660   :  { %v666_v18 = vsel %vm221_vm2, %v555_v62, %v2168_v16  ;;  %v665_v19 = vsel %vm221_vm2, %v507_v57, %v2167_v17  ;;  %v2188_v62 = vld [vmem:[%s2818_s10] sm:$0xff]  }
 0x661   :  { %v667_v20 = vpack.c.bf16 %v666_v18, %v665_v19 }
 0x663   :  { %2038 = vmatmul.mubr.msk.bf16.vlgmr.msra.gmra.mxu1 %vm102_vm0, %v667_v20 }
 0x664   :  { %2057 = vmatprep.mubr.msk.bf16.mxu1 %vm2372_vm1, %v2371_v15  ;;  %2050 = vmatpush3.bf16.msra.mxu1 %v2185_v59 }
 0x665   :  { %2051 = vmatprep.subr.bf16.mxu1 %v2371_v15 }
 0x668   :  { %2052 = vmatpush3.bf16.msra.mxu1 %v2186_v60 }
 0x669   :  { %2053 = vmatprep.subr.bf16.mxu1 %v2371_v15 }
 0x66c   :  { %2054 = vmatpush3.bf16.msra.mxu1 %v2187_v61  ;;  %v1866_v61 = vld [vmem:[#allocation5 + $0x1] ss:$0 sm:$0xff] }
 0x66d   :  { %2055 = vmatprep.subr.bf16.mxu1 %v2371_v15 }
 0x670   :  { %2056 = vmatpush3.bf16.msra.mxu1 %v2188_v62 }
 0x671   :  { %2075 = vmatprep.subr.bf16.mxu1 %v2371_v15 }
 0x723   :  { %v728_v22 = vpop.f32.mrf.mxu1 }
 0x724   :  { %v729_v23 = vadd.f32 %v1848_v21, %v728_v22 }
 0x725   :  { %v2039_v24 = vpop.f32.mrf.mxu1 }
 0x726   :  { %v2588_v25 = vadd.f32 %v729_v23, %v2466_v0 }
 0x727   :  { %v731_v26 = vpop.f32.mrf.mxu1 }
 0x728   :  { %v732_v27 = vadd.f32 %v1848_v21, %v731_v26  ;;  %v739_v28 = vsel %vm102_vm0, %v2588_v25, 0.0 }
 0x729   :  { %740 = vadd.xlane.f32.xlu0 %v739_v28  ;;  %v2040_v29 = vpop.f32.mrf.mxu1 }
 0x72a   :  { %v2593_v30 = vadd.f32 %v732_v27, %v2468_v1  ;;  %v1858_v29 = vld [vmem:[#allocation8] ss:$0 sm:$0xff] }
 0x72c   :  { %v742_v31 = vsel %vm102_vm0, %v2593_v30, 0.0 }
 0x72d   :  { %743 = vadd.xlane.f32.xlu1 %v742_v31 }
 0x7b2   :  { %v741_v32 = vpop.xlane.xlu0 %740 }
 0x7b3   :  { %v745_v33 = vmul.f32 0.03125, %v741_v32 }
 0x7b5   :  { %v747_v34 = vsub.f32 %v2588_v25, %v745_v33 }
 0x7b6   :  { %v744_v0 = vpop.xlane.xlu1 %743 }
 0x7b7   :  { %v746_v35 = vmul.f32 0.03125, %v744_v0  ;;  %v749_v36 = vmul.f32 %v747_v34, %v747_v34 }
 0x7b9   :  { %v748_v37 = vsub.f32 %v2593_v30, %v746_v35  ;;  %v751_v38 = vsel %vm102_vm0, %v749_v36, 0.0 }
 0x7ba   :  { %752 = vadd.xlane.f32.xlu0 %v751_v38 }
 0x7bb   :  { %v750_v40 = vmul.f32 %v748_v37, %v748_v37 }
 0x7bd   :  { %v754_v1 = vsel %vm102_vm0, %v750_v40, 0.0 }
 0x7be   :  { %755 = vadd.xlane.f32.xlu0 %v754_v1 }
 0x843   :  { %v753_v43 = vpop.xlane.xlu0 %752 }
 0x844   :  { %v757_v44 = vmul.f32 0.03125, %v753_v43 }
 0x846   :  { %v759_v45 = vadd.f32 1e-05, %v757_v44 }
 0x847   :  { %v756_v39 = vpop.xlane.xlu0 %755 }
 0x848   :  { %2219 = vrsqrt.f32 %v759_v45  ;;  %v758_v46 = vmul.f32 0.03125, %v756_v39 }
 0x84a   :  { %v760_v47 = vadd.f32 1e-05, %v758_v46 }
 0x84c   :  { %2221 = vrsqrt.f32 %v760_v47  ;;  %v2189_v47 = vld [vmem:[%s2811_s3 + $0x18] sm:$0xff]  }
 0x855   :  { %v2220_v48 = vpop.eup %2219 }
 0x856   :  { %v763_v49 = vmul.f32 %v2220_v48, %v747_v34  ;;  %v2190_v48 = vld [vmem:[%s2811_s3 + $0x10] sm:$0xff]  }
 0x858   :  { %v771_v53 = vmul.f32 %v1852_v50, %v763_v49 }
 0x859   :  { %v2222_v51 = vpop.eup %2221 }
 0x85a   :  { %v764_v52 = vmul.f32 %v2222_v51, %v748_v37  ;;  %v779_v56 = vadd.f32 %v1853_v54, %v771_v53 }
 0x85c   :  { %v772_v55 = vmul.f32 %v1852_v50, %v764_v52 }
 0x85e   :  { %v780_v57 = vadd.f32 %v1853_v54, %v772_v55 }
 0x860   :  { %v781_v58 = vpack.c.bf16 %v780_v57, %v779_v56  ;;  %v1865_v57 = vld [vmem:[%s2809_s1 + $0x1] ss:$0 sm:$0xff] }
 0x862   :  { %2046 = vmatmul.mubr.msk.bf16.vlgmr.msra.gmra.mxu0 %vm102_vm0, %v781_v58 }
 0x863   :  { %2065 = vmatprep.mubr.msk.bf16.mxu0 %vm2372_vm1, %v2371_v15  ;;  %2062 = vmatpush3.bf16.msra.mxu0 %v2189_v47 }
 0x864   :  { %2063 = vmatprep.subr.bf16.mxu0 %v2371_v15 }
 0x867   :  { %2064 = vmatpush3.bf16.msra.mxu0 %v2190_v48 }
 0x868   :  { %2069 = vmatprep.subr.bf16.mxu0 %v2371_v15 }
 0x922   :  { %v842_v2 = vpop.f32.mrf.mxu0 }
 0x923   :  { %v843_v3 = vadd.f32 %v1854_v63, %v842_v2 }
 0x924   :  { %v2047_v4 = vpop.f32.mrf.mxu0 }
 0x925   :  { %v851_v5 = vmul.f32 %v843_v3, %v843_v3  ;;  %v849_v22 = vmul.f32 0.5, %v843_v3 }
 0x926   :  { %v845_v6 = vpop.f32.mrf.mxu0 }
 0x927   :  { %v853_v7 = vmul.f32 %v851_v5, %v843_v3  ;;  %v846_v8 = vadd.f32 %v1854_v63, %v845_v6 }
 0x928   :  { %v2048_v9 = vpop.f32.mrf.mxu0 }
 0x929   :  { %v855_v10 = vmul.f32 0.044715, %v853_v7  ;;  %v852_v11 = vmul.f32 %v846_v8, %v846_v8  ;;  %v850_v23 = vmul.f32 0.5, %v846_v8 }
 0x92b   :  { %v857_v12 = vadd.f32 %v855_v10, %v843_v3  ;;  %v854_v13 = vmul.f32 %v852_v11, %v846_v8 }
 0x92d   :  { %v859_v14 = vmul.f32 0.7978846, %v857_v12  ;;  %v856_v16 = vmul.f32 0.044715, %v854_v13 }
 0x92f   :  { %2223 = vtanh.f32 %v859_v14  ;;  %v858_v17 = vadd.f32 %v856_v16, %v846_v8 }
 0x931   :  { %v860_v18 = vmul.f32 0.7978846, %v858_v17 }
 0x933   :  { %2225 = vtanh.f32 %v860_v18 }
 0x93c   :  { %v2224_v19 = vpop.eup %2223 }
 0x93d   :  { %v863_v20 = vadd.f32 1.0, %v2224_v19 }
 0x93f   :  { %v865_v26 = vmul.f32 %v863_v20, %v849_v22 }
 0x940   :  { %v2226_v21 = vpop.eup %2225 }
 0x941   :  { %v864_v24 = vadd.f32 1.0, %v2226_v21 }
 0x943   :  { %v866_v27 = vmul.f32 %v864_v24, %v850_v23 }
 0x945   :  { %v867_v28 = vpack.c.bf16 %v866_v27, %v865_v26 }
 0x947   :  { %2058 = vmatmul.mubr.msk.bf16.vlgmr.msra.gmra.mxu1 %vm907_vm5, %v867_v28 }
 0x948   :  { %2077 = vmatprep.mubr.msk.bf16.mxu1 %vm2372_vm1, %v2371_v15 }
 0xa07   :  { %v945_v31 = vpop.f32.mrf.mxu1 }
 0xa08   :  { %v946_v32 = vadd.f32 %v1858_v29, %v945_v31 }
 0xa09   :  { %v2059_v33 = vpop.f32.mrf.mxu1 }
 0xa0a   :  { %v2638_v34 = vadd.f32 %v946_v32, %v2588_v25 }
 0xa0b   :  { %v948_v0 = vpop.f32.mrf.mxu1 }
 0xa0c   :  { %v949_v35 = vadd.f32 %v1858_v29, %v948_v0  ;;  %v958_v36 = vsel %vm102_vm0, %v2638_v34, 0.0 }
 0xa0d   :  { %959 = vadd.xlane.f32.xlu0 %v958_v36  ;;  %v2060_v37 = vpop.f32.mrf.mxu1 }
 0xa0e   :  { %v2643_v38 = vadd.f32 %v949_v35, %v2593_v30 }
 0xa10   :  { %v961_v40 = vsel %vm102_vm0, %v2643_v38, 0.0 }
 0xa11   :  { %962 = vadd.xlane.f32.xlu1 %v961_v40 }
 0xa96   :  { %v960_v1 = vpop.xlane.xlu0 %959 }
 0xa97   :  { %v964_v41 = vmul.f32 0.03125, %v960_v1 }
 0xa99   :  { %v966_v42 = vsub.f32 %v2638_v34, %v964_v41 }
 0xa9a   :  { %v963_v25 = vpop.xlane.xlu1 %962 }
 0xa9b   :  { %v965_v43 = vmul.f32 0.03125, %v963_v25  ;;  %v968_v44 = vmul.f32 %v966_v42, %v966_v42 }
 0xa9d   :  { %v967_v45 = vsub.f32 %v2643_v38, %v965_v43  ;;  %v970_v39 = vsel %vm102_vm0, %v968_v44, 0.0 }
 0xa9e   :  { %971 = vadd.xlane.f32.xlu0 %v970_v39 }
 0xa9f   :  { %v969_v46 = vmul.f32 %v967_v45, %v967_v45 }
 0xaa1   :  { %v973_v30 = vsel %vm102_vm0, %v969_v46, 0.0 }
 0xaa2   :  { %974 = vadd.xlane.f32.xlu1 %v973_v30 }
 0xb27   :  { %v972_v49 = vpop.xlane.xlu0 %971 }
 0xb28   :  { %v976_v50 = vmul.f32 0.03125, %v972_v49 }
 0xb2a   :  { %v978_v51 = vadd.f32 1e-05, %v976_v50 }
 0xb2b   :  { %v975_v52 = vpop.xlane.xlu1 %974 }
 0xb2c   :  { %2227 = vrsqrt.f32 %v978_v51  ;;  %v977_v53 = vmul.f32 0.03125, %v975_v52 }
 0xb2e   :  { %v979_v54 = vadd.f32 1e-05, %v977_v53 }
 0xb30   :  { %2229 = vrsqrt.f32 %v979_v54 }
 0xb39   :  { %v2228_v55 = vpop.eup %2227 }
 0xb3a   :  { %v982_v56 = vmul.f32 %v2228_v55, %v966_v42 }
 0xb3c   :  { %v990_v60 = vmul.f32 %v1865_v57, %v982_v56 }
 0xb3d   :  { %v2230_v58 = vpop.eup %2229 }
 0xb3e   :  { %v983_v59 = vmul.f32 %v2230_v58, %v967_v45  ;;  %v998_v63 = vadd.f32 %v1866_v61, %v990_v60 }
 0xb40   :  { %v991_v62 = vmul.f32 %v1865_v57, %v983_v59 }
 0xb42   :  { %v999_v2 = vadd.f32 %v1866_v61, %v991_v62 }
 0xb44   :  { %v1000_v3 = vpack.c.bf16 %v999_v2, %v998_v63 }
 0xb46   :  { %2066 = vmatmul.mubr.msk.bf16.vlgmr.msra.gmra.mxu0 %vm102_vm0, %v1000_v3 }
 0xb47   :  { %2071 = vmatprep.mubr.msk.bf16.mxu0 %vm2372_vm1, %v2371_v15 }
 0xc06   :  { %v1055_v4 = vpop.f32.mrf.mxu0 }
 0xc07   :  { %v1070_v5 = vpack.c.bf16 %v1055_v4, %v1055_v4 }
 0xc08   :  { %v2067_v6 = vpop.f32.mrf.mxu0 }
 0xc09   :  { %1075 = vrot.lane.b32.xlu1 %v1070_v5, %s2373_s30 }
 0xc0a   :  { %v1058_v7 = vpop.f32.mrf.mxu0 }
 0xc0b   :  { %v2169_v8 = vpack.i.bf16 %v1058_v7, %v1055_v4  ;;  %v2666_v9 = vpack.c.bf16 %v1058_v7, %v1058_v7 }
 0xc0c   :  { %v2068_v10 = vpop.f32.mrf.mxu0 }
 0xc0d   :  { %2170 = vrot.lane.b32.xlu0 %v2169_v8, %s2374_s15  ;;  %1124 = vrot.lane.b32.xlu1 %v2666_v9, %s2373_s30 }
 0xc7b   :  { %v1076_v11 = vpop.permute.xlu1 %1075 }
 0xc7c   :  { %v1081_v12 = vsel %vm221_vm2, %v1076_v11, 0 }
 0xc7d   :  { %2070 = vmatpush3.bf16.xpose.msra.mxu0 %v1081_v12 }
 0xc7e   :  { %2081 = vmatprep.subr.bf16.mxu0 %v2371_v15 }
 0xc7f   :  { %v2171_v13 = vpop.permute.xlu0 %2170  ;;  %v1125_v14 = vpop.permute.xlu1 %1124 }
 0xc80   :  { %v2173_v16 = vunpack.i.h.bf16 %v2171_v13  ;;  %v2172_v17 = vunpack.i.l.bf16 %v2171_v13  ;;  %v1130_v18 = vsel %vm221_vm2, %v1125_v14, 0 }
 0xc81   :  { %2076 = vmatpush3.bf16.xpose.msra.mxu1 %v1130_v18 }
 0xc82   :  { %v2674_v19 = vpack.c.bf16 %v2173_v16, %v2173_v16  ;;  %v2676_v20 = vpack.c.bf16 %v2172_v17, %v2172_v17  ;;  %2087 = vmatprep.subr.bf16.mxu1 %v2371_v15 }
 0xc84   :  { %2072 = vmatmul.mubr.msk.bf16.vlgmr.msra.gmra.mxu0 %vm221_vm2, %v1070_v5  ;;  %1222 = vrot.lane.b32.xlu0 %v2674_v19, %s2373_s30 }
 0xc85   :  { %1173 = vrot.lane.b32.xlu1 %v2676_v20, %s2373_s30  ;;  %2083 = vmatprep.mubr.msk.bf16.mxu0 %vm2372_vm1, %v2371_v15 }
 0xc88   :  { %2078 = vmatmul.mubr.msk.bf16.vlgmr.msra.gmra.mxu1 %vm221_vm2, %v2666_v9 }
 0xc89   :  { %2089 = vmatprep.mubr.msk.bf16.mxu1 %vm2372_vm1, %v2371_v15 }
 0xcf6   :  { %v1223_v21 = vpop.permute.xlu0 %1222 }
 0xcf7   :  { %v1228_v22 = vsel %vm221_vm2, %v1223_v21, 0  ;;  %v1174_v23 = vpop.permute.xlu1 %1173 }
 0xcf8   :  { %v1179_v24 = vsel %vm221_vm2, %v1174_v23, 0  ;;  %2088 = vmatpush3.bf16.xpose.msra.mxu1 %v1228_v22 }
 0xcf9   :  { %2082 = vmatpush3.bf16.xpose.msra.mxu0 %v1179_v24  ;;  %2099 = vmatprep.subr.bf16.mxu1 %v2371_v15 }
 0xcfa   :  { %2093 = vmatprep.subr.bf16.mxu0 %v2371_v15 }
 0xcff   :  { %2090 = vmatmul.mubr.msk.bf16.vlgmr.msra.gmra.mxu1 %vm221_vm2, %v2674_v19 }
 0xd00   :  { %2084 = vmatmul.mubr.msk.bf16.vlgmr.msra.gmra.mxu0 %vm221_vm2, %v2676_v20  ;;  %2101 = vmatprep.mubr.msk.bf16.mxu1 %vm2372_vm1, %v2371_v15 }
 0xd01   :  { %2095 = vmatprep.mubr.msk.bf16.mxu0 %vm2372_vm1, %v2371_v15 }
 0xd44   :  { %v1117_v26 = vpop.f32.mrf.mxu0 }
 0xd45   :  { %v1270_v27 = vsel %vm415_vm3, %v1117_v26, -inf }
 0xd46   :  { %1271 = vmax.xlane.f32.xlu1 %v1270_v27  ;;  %v2073_v28 = vpop.f32.mrf.mxu0 }
 0xd48   :  { %v1120_v29 = vpop.f32.mrf.mxu0  ;;  %v1166_v31 = vpop.f32.mrf.mxu1 }
 0xd49   :  { %v1273_v32 = vsel %vm415_vm3, %v1166_v31, -inf }
 0xd4a   :  { %v2074_v33 = vpop.f32.mrf.mxu0  ;;  %1274 = vmax.xlane.f32.xlu0 %v1273_v32  ;;  %v2079_v0 = vpop.f32.mrf.mxu1 }
 0xd4b   :  { %v2191_v0 = vld [vmem:[%s2812_s4 + $0x18] sm:$0xff]  }
 0xd4c   :  { %v1169_v35 = vpop.f32.mrf.mxu1 }
 0xd4e   :  { %v2080_v36 = vpop.f32.mrf.mxu1 }
 0xd4f   :  { %v2192_v36 = vld [vmem:[%s2812_s4 + $0x10] sm:$0xff]  }
 0xd57   :  { %1318 = vrot.lane.b32.xlu1 %v1070_v5, %s2375_s16 }
 0xdbf   :  { %v1264_v37 = vpop.f32.mrf.mxu1 }
 0xdc0   :  { %v1215_v40 = vpop.f32.mrf.mxu0  ;;  %v1279_v44 = vsel %vm415_vm3, %v1264_v37, -inf }
 0xdc1   :  { %v1276_v1 = vsel %vm415_vm3, %v1215_v40, -inf  ;;  %v2091_v41 = vpop.f32.mrf.mxu1 }
 0xdc2   :  { %v2085_v42 = vpop.f32.mrf.mxu0  ;;  %1277 = vmax.xlane.f32.xlu0 %v1276_v1 }
 0xdc3   :  { %v1267_v25 = vpop.f32.mrf.mxu1 }
 0xdc4   :  { %v1218_v43 = vpop.f32.mrf.mxu0 }
 0xdc5   :  { %v2092_v45 = vpop.f32.mrf.mxu1 }
 0xdc6   :  { %v2086_v39 = vpop.f32.mrf.mxu0  ;;  %1280 = vmax.xlane.f32.xlu0 %v1279_v44 }
 0xdcf   :  { %v1272_v46 = vpop.xlane.xlu1 %1271 }
 0xdd0   :  { %v1282_v30 = vsub.f32 %v1117_v26, %v1272_v46 }
 0xdd2   :  { %v1286_v47 = vmul.f32 1.442695, %v1282_v30 }
 0xdd3   :  { %v1319_v48 = vpop.permute.xlu1 %1318  ;;  %v1275_v49 = vpop.xlane.xlu0 %1274 }
 0xdd4   :  { %2231 = vpow2.f32 %v1286_v47  ;;  %v1324_v50 = vsel %vm469_vm4, %v1319_v48, 0  ;;  %v1283_v51 = vsub.f32 %v1166_v31, %v1275_v49 }
 0xdd5   :  { %2094 = vmatpush3.bf16.msra.mxu0 %v1324_v50 }
 0xdd6   :  { %v1288_v52 = vmul.f32 1.442695, %v1283_v51  ;;  %2105 = vmatprep.subr.bf16.mxu0 %v2371_v15 }
 0xdd8   :  { %2233 = vpow2.f32 %v1288_v52 }
 0xde1   :  { %v2232_v53 = vpop.eup %2231 }
 0xde2   :  { %v1294_v54 = vsel %vm415_vm3, %v2232_v53, 0.0 }
 0xde3   :  { %1295 = vadd.xlane.f32.xlu1 %v1294_v54 }
 0xde5   :  { %v2234_v55 = vpop.eup %2233 }
 0xde6   :  { %v1297_v56 = vsel %vm415_vm3, %v2234_v55, 0.0 }
 0xde7   :  { %1298 = vadd.xlane.f32.xlu0 %v1297_v56 }
 0xe4b   :  { %v1278_v57 = vpop.xlane.xlu0 %1277 }
 0xe4c   :  { %v1284_v58 = vsub.f32 %v1215_v40, %v1278_v57 }
 0xe4e   :  { %v1290_v59 = vmul.f32 1.442695, %v1284_v58 }
 0xe4f   :  { %v1281_v60 = vpop.xlane.xlu0 %1280 }
 0xe50   :  { %2235 = vpow2.f32 %v1290_v59  ;;  %v1285_v61 = vsub.f32 %v1264_v37, %v1281_v60 }
 0xe52   :  { %v1292_v62 = vmul.f32 1.442695, %v1285_v61 }
 0xe54   :  { %2237 = vpow2.f32 %v1292_v62 }
 0xe5d   :  { %v2236_v63 = vpop.eup %2235 }
 0xe5e   :  { %v1300_v2 = vsel %vm415_vm3, %v2236_v63, 0.0 }
 0xe5f   :  { %1301 = vadd.xlane.f32.xlu1 %v1300_v2 }
 0xe61   :  { %v2238_v3 = vpop.eup %2237 }
 0xe62   :  { %v1303_v4 = vsel %vm415_vm3, %v2238_v3, 0.0 }
 0xe63   :  { %1304 = vadd.xlane.f32.xlu0 %v1303_v4 }
 0xe6c   :  { %v1296_v5 = vpop.xlane.xlu1 %1295 }
 0xe6d   :  { %2239 = vrcp.f32 %v1296_v5 }
 0xe70   :  { %1414 = vrot.lane.b32.xlu1 %v2676_v20, %s2375_s16  ;;  %v1299_v10 = vpop.xlane.xlu0 %1298 }
 0xe71   :  { %2241 = vrcp.f32 %v1299_v10 }
 0xe74   :  { %1462 = vrot.lane.b32.xlu1 %v2674_v19, %s2375_s16 }
 0xe79   :  { %1366 = vrot.lane.b32.xlu0 %v2666_v9, %s2375_s16 }
 0xe7a   :  { %v2240_v6 = vpop.eup %2239 }
 0xe7b   :  { %v1310_v7 = vmul.f32 %v2240_v6, %v2232_v53  ;;  %v1887_v53 = vld [vmem:[%s2813_s5 + $0x1] ss:$0 sm:$0xff] }
 0xe7d   :  { %v1314_v8 = vpack.c.bf16 %v1310_v7, %v1310_v7 }
 0xe7e   :  { %v2242_v12 = vpop.eup %2241 }
 0xe7f   :  { %2096 = vmatmul.mubr.msk.bf16.vlgmr.msra.gmra.mxu0 %vm415_vm3, %v1314_v8  ;;  %v1311_v9 = vmul.f32 %v2242_v12, %v2234_v55  ;;  %v2194_v12 = vld [vmem:[%s2816_s8 + $0x10] sm:$0xff]  }
 0xe80   :  { %2107 = vmatprep.mubr.msk.bf16.mxu0 %vm2372_vm1, %v2371_v15 }
 0xe81   :  { %v1315_v20 = vpack.c.bf16 %v1311_v9, %v1311_v9 }
 0xee8   :  { %v1302_v11 = vpop.xlane.xlu1 %1301 }
 0xee9   :  { %2243 = vrcp.f32 %v1302_v11  ;;  %v2193_v11 = vld [vmem:[%s2816_s8 + $0x18] sm:$0xff]  }
 0xeec   :  { %v1415_v13 = vpop.permute.xlu1 %1414  ;;  %v1305_v14 = vpop.xlane.xlu0 %1304 }
 0xeed   :  { %v1420_v16 = vsel %vm469_vm4, %v1415_v13, 0  ;;  %2245 = vrcp.f32 %v1305_v14 }
 0xeee   :  { %2106 = vmatpush3.bf16.msra.mxu0 %v1420_v16 }
 0xeef   :  { %2117 = vmatprep.subr.bf16.mxu0 %v2371_v15 }
 0xef0   :  { %v1367_v17 = vpop.permute.xlu0 %1366  ;;  %v1463_v19 = vpop.permute.xlu1 %1462 }
 0xef1   :  { %v1372_v18 = vsel %vm469_vm4, %v1367_v17, 0  ;;  %v1468_v21 = vsel %vm469_vm4, %v1463_v19, 0 }
 0xef2   :  { %2100 = vmatpush3.bf16.msra.mxu1 %v1372_v18 }
 0xef3   :  { %2111 = vmatprep.subr.bf16.mxu1 %v2371_v15 }
 0xef5   :  { %2102 = vmatmul.mubr.msk.bf16.vlgmr.msra.gmra.mxu1 %vm415_vm3, %v1315_v20 }
 0xef6   :  { %v2244_v22 = vpop.eup %2243  ;;  %2112 = vmatpush3.bf16.msra.mxu1 %v1468_v21  ;;  %2113 = vmatprep.mubr.msk.bf16.mxu1 %vm2372_vm1, %v2371_v15  ;;  %v1893_v21 = vld [vmem:[%s2814_s6 + $0x1] ss:$0 sm:$0xff] }
 0xef7   :  { %v1312_v23 = vmul.f32 %v2244_v22, %v2236_v63  ;;  %2125 = vmatprep.subr.bf16.mxu1 %v2371_v15 }
 0xef9   :  { %v1316_v24 = vpack.c.bf16 %v1312_v23, %v1312_v23 }
 0xefa   :  { %v2246_v26 = vpop.eup %2245 }
 0xefb   :  { %2108 = vmatmul.mubr.msk.bf16.vlgmr.msra.gmra.mxu0 %vm415_vm3, %v1316_v24  ;;  %v1313_v27 = vmul.f32 %v2246_v26, %v2238_v3  ;;  %v1894_v26 = vld [vmem:[%s2815_s7 + $0x1] ss:$0 sm:$0xff] }
 0xefc   :  { %2121 = vmatprep.mubr.msk.bf16.mxu0 %vm2372_vm1, %v2371_v15  ;;  %2118 = vmatpush3.bf16.msra.mxu0 %v2191_v0  ;;  %v2197_v0 = vld [vmem:[%s2818_s10 + $0x28] sm:$0xff]  }
 0xefd   :  { %v1317_v28 = vpack.c.bf16 %v1313_v27, %v1313_v27  ;;  %2119 = vmatprep.subr.bf16.mxu0 %v2371_v15 }
 0xeff   :  { %2114 = vmatmul.mubr.msk.bf16.vlgmr.msra.gmra.mxu1 %vm415_vm3, %v1317_v28 }
 0xf00   :  { %2129 = vmatprep.mubr.msk.bf16.mxu1 %vm2372_vm1, %v2371_v15  ;;  %2120 = vmatpush3.bf16.msra.mxu0 %v2192_v36  ;;  %v1899_v36 = vld [vmem:[#allocation7 + $0x1] ss:$0 sm:$0xff] }
 0xf01   :  { %2133 = vmatprep.subr.bf16.mxu0 %v2371_v15  ;;  %2126 = vmatpush3.bf16.msra.mxu1 %v2193_v11 }
 0xf02   :  { %2127 = vmatprep.subr.bf16.mxu1 %v2371_v15 }
 0xf05   :  { %2128 = vmatpush3.bf16.msra.mxu1 %v2194_v12 }
 0xf3f   :  { %v1360_v29 = vpop.f32.mrf.mxu0 }
 0xf41   :  { %v2097_v31 = vpop.f32.mrf.mxu0 }
 0xf43   :  { %v1363_v32 = vpop.f32.mrf.mxu0 }
 0xf44   :  { %v2195_v32 = vld [vmem:[%s2818_s10 + $0x38] sm:$0xff]  }
 0xf45   :  { %v2098_v33 = vpop.f32.mrf.mxu0 }
 0xf46   :  { %v2196_v33 = vld [vmem:[%s2818_s10 + $0x30] sm:$0xff]  }
 0xfb5   :  { %v1408_v35 = vpop.f32.mrf.mxu1 }
 0xfb7   :  { %v2103_v37 = vpop.f32.mrf.mxu1 }
 0xfb9   :  { %v1411_v40 = vpop.f32.mrf.mxu1 }
 0xfbb   :  { %v2104_v1 = vpop.f32.mrf.mxu1  ;;  %v1456_v41 = vpop.f32.mrf.mxu0 }
 0xfbd   :  { %v2109_v42 = vpop.f32.mrf.mxu0 }
 0xfbf   :  { %v1459_v25 = vpop.f32.mrf.mxu0  ;;  %v1504_v43 = vpop.f32.mrf.mxu1 }
 0xfc0   :  { %v2174_v44 = vpack.i.bf16 %v1504_v43, %v1456_v41 }
 0xfc1   :  { %v2110_v45 = vpop.f32.mrf.mxu0  ;;  %v2115_v39 = vpop.f32.mrf.mxu1 }
 0xfc2   :  { %2175 = vrot.lane.b32.xlu1 %v2174_v44, %s2364_s24 }
 0xfc3   :  { %v1507_v46 = vpop.f32.mrf.mxu1 }
 0xfc5   :  { %v2116_v30 = vpop.f32.mrf.mxu1 }
0x1034   :  { %v2176_v47 = vpop.permute.xlu1 %2175 }
0x1035   :  { %v2178_v48 = vunpack.i.h.bf16 %v2176_v47  ;;  %v2177_v49 = vunpack.i.l.bf16 %v2176_v47 }
0x1037   :  { %v1519_v50 = vsel %vm221_vm2, %v1408_v35, %v2178_v48  ;;  %v1518_v51 = vsel %vm221_vm2, %v1360_v29, %v2177_v49  ;;  %v2198_v35 = vld [vmem:[%s2818_s10 + $0x20] sm:$0xff]   ;;  %s2376_s10 = smov [#allocation10]  }
0x1038   :  { %v1520_v52 = vpack.c.bf16 %v1519_v50, %v1518_v51  ;;  %s1821_s0 = sshll.u32 %s2376_s10, 4  ;;  %s1822_s0 = int_to_ptr.vmem [resolvable:$true] %s1821_s0 }
0x1039   :  { %s2335_s23 = scalar_lea.vmem %s1822_s0, 256  ;;  %p2340_p7 = scmp.lt.s32.totalorder %s1822_s0, %s1822_s0 }
0x103a   :  { %2122 = vmatmul.mubr.msk.bf16.vlgmr.msra.gmra.mxu0 %vm102_vm0, %v1520_v52  ;;  %p2336_p6 = scmp.ne.s32.totalorder %s1822_s0, %s2335_s23  ;;  %p2341_p8 = scmp.lt.s32.totalorder %s2335_s23, %s2335_s23 }
0x103b   :  { %2141 = vmatprep.mubr.msk.bf16.mxu0 %vm2372_vm1, %v2371_v15  ;;  %2134 = vmatpush3.bf16.msra.mxu0 %v2195_v32 }
0x103c   :  { %2135 = vmatprep.subr.bf16.mxu0 %v2371_v15  ;;  %p2342_p9 = por %p2341_p8, %p2340_p7 }
0x103e   :  { %p2343_p10 = pnand %p2342_p9, %p2336_p6 }
0x103f   :  { %2136 = vmatpush3.bf16.msra.mxu0 %v2196_v33 }
0x1040   :  { %2137 = vmatprep.subr.bf16.mxu0 %v2371_v15 }
0x1043   :  { %2138 = vmatpush3.bf16.msra.mxu0 %v2197_v0 }
0x1044   :  { %2139 = vmatprep.subr.bf16.mxu0 %v2371_v15 }
0x1047   :  { %2140 = vmatpush3.bf16.msra.mxu0 %v2198_v35 }
0x10fa   :  { %v1583_v54 = vpop.f32.mrf.mxu0 }
0x10fb   :  { %v1584_v55 = vadd.f32 %v1887_v53, %v1583_v54 }
0x10fc   :  { %v2123_v56 = vpop.f32.mrf.mxu0 }
0x10fd   :  { %v2755_v57 = vadd.f32 %v1584_v55, %v2638_v34 }
0x10fe   :  { %v1586_v58 = vpop.f32.mrf.mxu0 }
0x10ff   :  { %v1587_v59 = vadd.f32 %v1887_v53, %v1586_v58  ;;  %v1596_v60 = vsel %vm102_vm0, %v2755_v57, 0.0 }
0x1100   :  { %1597 = vadd.xlane.f32.xlu0 %v1596_v60  ;;  %v2124_v61 = vpop.f32.mrf.mxu0  ;;  %v1911_v60 = vld [vmem:[#allocation8 + $0x1] ss:$0 sm:$0xff] }
0x1101   :  { %v2760_v62 = vadd.f32 %v1587_v59, %v2643_v38 }
0x1103   :  { %v1599_v63 = vsel %vm102_vm0, %v2760_v62, 0.0 }
0x1104   :  { %1600 = vadd.xlane.f32.xlu1 %v1599_v63 }
0x1189   :  { %v1598_v2 = vpop.xlane.xlu0 %1597 }
0x118a   :  { %v1602_v3 = vmul.f32 0.03125, %v1598_v2 }
0x118c   :  { %v1604_v4 = vsub.f32 %v2755_v57, %v1602_v3 }
0x118d   :  { %v1601_v34 = vpop.xlane.xlu1 %1600 }
0x118e   :  { %v1603_v5 = vmul.f32 0.03125, %v1601_v34  ;;  %v1606_v6 = vmul.f32 %v1604_v4, %v1604_v4 }
0x1190   :  { %v1605_v7 = vsub.f32 %v2760_v62, %v1603_v5  ;;  %v1608_v8 = vsel %vm102_vm0, %v1606_v6, 0.0 }
0x1191   :  { %1609 = vadd.xlane.f32.xlu0 %v1608_v8 }
0x1192   :  { %v1607_v10 = vmul.f32 %v1605_v7, %v1605_v7 }
0x1194   :  { %v1611_v38 = vsel %vm102_vm0, %v1607_v10, 0.0 }
0x1195   :  { %1612 = vadd.xlane.f32.xlu0 %v1611_v38 }
0x121a   :  { %v1610_v13 = vpop.xlane.xlu0 %1609 }
0x121b   :  { %v1614_v14 = vmul.f32 0.03125, %v1610_v13 }
0x121d   :  { %v1616_v16 = vadd.f32 1e-05, %v1614_v14 }
0x121e   :  { %v1613_v9 = vpop.xlane.xlu0 %1612 }
0x121f   :  { %2247 = vrsqrt.f32 %v1616_v16  ;;  %v1615_v17 = vmul.f32 0.03125, %v1613_v9 }
0x1221   :  { %v1617_v18 = vadd.f32 1e-05, %v1615_v17 }
0x1223   :  { %2249 = vrsqrt.f32 %v1617_v18 }
0x122c   :  { %v2248_v19 = vpop.eup %2247 }
0x122d   :  { %v1620_v20 = vmul.f32 %v2248_v19, %v1604_v4 }
0x122f   :  { %v1628_v24 = vmul.f32 %v1893_v21, %v1620_v20 }
0x1230   :  { %v2250_v22 = vpop.eup %2249 }
0x1231   :  { %v1621_v23 = vmul.f32 %v2250_v22, %v1605_v7  ;;  %v1636_v28 = vadd.f32 %v1894_v26, %v1628_v24 }
0x1233   :  { %v1629_v27 = vmul.f32 %v1893_v21, %v1621_v23 }
0x1235   :  { %v1637_v29 = vadd.f32 %v1894_v26, %v1629_v27 }
0x1237   :  { %v1638_v31 = vpack.c.bf16 %v1637_v29, %v1636_v28 }
0x1239   :  { %2130 = vmatmul.mubr.msk.bf16.vlgmr.msra.gmra.mxu1 %vm102_vm0, %v1638_v31 }
0x12f9   :  { %v1701_v37 = vpop.f32.mrf.mxu1 }
0x12fa   :  { %v1702_v40 = vadd.f32 %v1899_v36, %v1701_v37 }
0x12fb   :  { %v2131_v1 = vpop.f32.mrf.mxu1 }
0x12fc   :  { %v1710_v41 = vmul.f32 %v1702_v40, %v1702_v40  ;;  %v1708_v53 = vmul.f32 0.5, %v1702_v40 }
0x12fd   :  { %v1704_v42 = vpop.f32.mrf.mxu1 }
0x12fe   :  { %v1712_v25 = vmul.f32 %v1710_v41, %v1702_v40  ;;  %v1705_v43 = vadd.f32 %v1899_v36, %v1704_v42 }
0x12ff   :  { %v2132_v44 = vpop.f32.mrf.mxu1 }
0x1300   :  { %v1714_v45 = vmul.f32 0.044715, %v1712_v25  ;;  %v1711_v39 = vmul.f32 %v1705_v43, %v1705_v43  ;;  %v1709_v54 = vmul.f32 0.5, %v1705_v43 }
0x1302   :  { %v1716_v46 = vadd.f32 %v1714_v45, %v1702_v40  ;;  %v1713_v30 = vmul.f32 %v1711_v39, %v1705_v43 }
0x1304   :  { %v1718_v47 = vmul.f32 0.7978846, %v1716_v46  ;;  %v1715_v15 = vmul.f32 0.044715, %v1713_v30 }
0x1306   :  { %2251 = vtanh.f32 %v1718_v47  ;;  %v1717_v48 = vadd.f32 %v1715_v15, %v1705_v43 }
0x1308   :  { %v1719_v49 = vmul.f32 0.7978846, %v1717_v48 }
0x130a   :  { %2253 = vtanh.f32 %v1719_v49 }
0x1313   :  { %v2252_v50 = vpop.eup %2251 }
0x1314   :  { %v1722_v51 = vadd.f32 1.0, %v2252_v50 }
0x1316   :  { %v1724_v56 = vmul.f32 %v1722_v51, %v1708_v53 }
0x1317   :  { %v2254_v52 = vpop.eup %2253 }
0x1318   :  { %v1723_v55 = vadd.f32 1.0, %v2254_v52 }
0x131a   :  { %v1725_v58 = vmul.f32 %v1723_v55, %v1709_v54 }
0x131c   :  { %v1726_v59 = vpack.c.bf16 %v1725_v58, %v1724_v56 }
0x131e   :  { %2142 = vmatmul.mubr.msk.bf16.vlgmr.msra.gmra.mxu0 %vm907_vm5, %v1726_v59 }
0x13de   :  { %v1805_v61 = vpop.f32.mrf.mxu0 }
0x13df   :  { %v1806_v63 = vadd.f32 %v1911_v60, %v1805_v61 }
0x13e0   :  { %v2143_v2 = vpop.f32.mrf.mxu0 }
0x13e1   :  { %v1812_v3 = vadd.f32 %v1806_v63, %v2755_v57 }
0x13e2   :  { %v1808_v4 = vpop.f32.mrf.mxu0 }
0x13e3   :  { %1814 = vst.msk [vmem:[#allocation10] sm:$0xff] %vm102_vm0, %v1812_v3  ;;  %v1809_v34 = vadd.f32 %v1911_v60, %v1808_v4 }
0x13e4   :  { %v2144_v5 = vpop.f32.mrf.mxu0 }
0x13e5   :  { %v1813_v6 = vadd.f32 %v1809_v34, %v2760_v62 }
0x13e7   :  { %1815 = vst.msk [vmem:[#allocation10 + $0x8] sm:$0xff] %vm102_vm0, %v1813_v6 }
0x13e8   :  { %2346 = shalt.err (!%p2343_p10)
}
0x13e9   :  { %1827 = dma.vmem_to_hbm [thread:$0]  %s1822_s0, 256, %s2820_s12, [#allocation4], %s2367_s13, %s2367_s13, %s2368_s14  }
0x13ea   :  { %2361 = dma.done.wait [#allocation4], 256  }
0x13eb   :  { %2362 = vsyncadd [#allocation4], 4294967040 }
0x13ec   :  { %1831 = vsyncpa [#allocation3], 1 }
0x13ed   :  { %1832 = vsyncpa [#allocation6], 1 }
0x13ee   :  { %1833 = vsyncpa [#allocation9], 1 }
0x13ef   :  { %1834 = vsyncpa [#allocation4], 1 }

</bundles_post_ra>
